<compile_context>
chip_gen: v7x
topology: tpu7x:2x2x1
jax: 0.10.0
libtpu: 0.0.40
codegen_flags: <defaults>
</compile_context>

<pallas_src>
import numpy as np
import jax
import jax.numpy as jnp
from jax import lax
from jax.experimental import pallas as pl
from jax.experimental.pallas import tpu as pltpu

# Small, PyTorch-module-consistent shapes: x is [batch, k, c, H, W] (square H=W is
# required by the rot90 group, exactly as in the torch module).
B, K, Cin, H, W = 2, 3, 4, 16, 16
Cout = 8
G = 4                        # rot90 group size
N = G * B * K                # 24 images fed through the conv
HW = H * W                   # 256
Ho, Wo = H // 2, W // 2      # after MaxPool2d(2, 2)
HW4 = Ho * Wo                # 64
F9 = 9 * Cin                 # 36 im2col features (3x3 taps x Cin)

S = 2                        # grid steps (>=2 so both v7x TensorCores get work)
IMGS = N // S                # 12 images per grid step
XCOLS = IMGS * HW            # 3072 im2col columns per step (multiple of 128)
OCOLS = IMGS * HW4           # 768 pooled output columns per step (multiple of 128)


def conv_relu_pool_kernel(x_ref, w_ref, b_ref, o_ref):
    # x_ref: (36, XCOLS)   transposed im2col; columns ordered (pool tap q, image, out pos)
    # w_ref: (Cout, 36)    conv weight, feature order (dy, dx, cin)
    # b_ref: (Cout, 1)     conv bias (broadcast along lanes)
    # o_ref: (Cout, OCOLS) pooled output (lane-dense store)
    y = jnp.dot(w_ref[...], x_ref[...],
                preferred_element_type=jnp.float32,
                precision=lax.Precision.HIGHEST)     # single well-shaped MXU matmul
    y = jnp.maximum(y + b_ref[...], 0.0)             # bias + ReLU (VPU)
    # 2x2 stride-2 max-pool: the 4 pooling-window taps are contiguous lane-aligned
    # column blocks of width OCOLS, so the pool is pure VPU maximum (no matmuls, no sel
    # table, no lane shuffles).
    p = jnp.maximum(y[:, 0 * OCOLS:1 * OCOLS], y[:, 1 * OCOLS:2 * OCOLS])
    p = jnp.maximum(p, y[:, 2 * OCOLS:3 * OCOLS])
    p = jnp.maximum(p, y[:, 3 * OCOLS:4 * OCOLS])
    o_ref[...] = p.astype(o_ref.dtype)


def conv_relu_pool(xT, w_mat, b_col):
    return pl.pallas_call(
        conv_relu_pool_kernel,
        out_shape=jax.ShapeDtypeStruct((Cout, N * HW4), jnp.float32),
        grid_spec=pltpu.PrefetchScalarGridSpec(
            num_scalar_prefetch=0,
            grid=(S,),
            in_specs=[
                pl.BlockSpec((F9, XCOLS), lambda s: (0, s)),
                pl.BlockSpec((Cout, F9), lambda s: (0, 0)),
                pl.BlockSpec((Cout, 1), lambda s: (0, 0)),
            ],
            out_specs=pl.BlockSpec((Cout, OCOLS), lambda s: (0, s)),
        ),
        compiler_params=pltpu.CompilerParams(
            dimension_semantics=("parallel",)),
    )(xT, w_mat, b_col)


@jax.jit
def equi_operator_forward(x, w_oihw, bias):
    """x: (B, K, Cin, H, W) float32 (same axis convention as the torch module)."""
    # group_transformed_input: stack rot90(x, k=i, dims=[-2,-1]) for i=0..3
    xg = jnp.stack([jnp.rot90(x, k=i, axes=(-2, -1)) for i in range(G)])  # (G,B,K,C,H,W)
    xi = xg.reshape(N, Cin, H, W)
    # NCHW -> NHWC, zero-pad (Conv2d padding=1)
    x_nhwc = jnp.transpose(xi, (0, 2, 3, 1))
    x_pad = jnp.pad(x_nhwc, ((0, 0), (1, 1), (1, 1), (0, 0)))
    # im2col with feature order (dy, dx, cin):  P[n, h, w, (dy*3+dx)*Cin+ci]
    patches = [x_pad[:, dy:dy + H, dx:dx + W, :] for dy in range(3) for dx in range(3)]
    P = jnp.concatenate(patches, axis=-1)                                 # (N, H, W, 36)
    # Reorder + transpose so the kernel sees a (36, N*HW) operand whose column index is
    #   ((((step*2 + di)*2 + dj)*IMGS + n_local)*Ho + i)*Wo + j,   h = 2i+di, w = 2j+dj
    # i.e. per grid step the 4 pool taps are contiguous lane-aligned column blocks.
    Pr = P.reshape(S, IMGS, Ho, 2, Wo, 2, F9)
    xT = jnp.transpose(Pr, (6, 0, 3, 5, 1, 2, 4)).reshape(F9, N * HW)     # (36, 6144)

    w_mat = jnp.transpose(w_oihw, (0, 2, 3, 1)).reshape(Cout, F9)         # (Cout, 36)
    b_col = bias.reshape(Cout, 1)

    out_t = conv_relu_pool(xT, w_mat, b_col)                              # (Cout, N*HW4)

    # Columns come back as n*HW4 + i*Wo + j -> direct NCHW.
    out = out_t.reshape(Cout, N, Ho, Wo).transpose(1, 0, 2, 3)            # (N,Cout,Ho,Wo)
    out = out.reshape(G, B, K, Cout, Ho, Wo)
    # inverse_group_transformed_hidden_output: rot90 with k = 4 - i
    out = jnp.stack([jnp.rot90(out[i], k=G - i, axes=(-2, -1)) for i in range(G)])
    # mean over the group dimension
    return jnp.mean(out, axis=0)                                          # (B,K,Cout,Ho,Wo)


@jax.jit
def reference_forward(x, w_oihw, bias):
    """Pure-JAX reference of the torch forward (conv + relu + maxpool path)."""
    xg = jnp.stack([jnp.rot90(x, k=i, axes=(-2, -1)) for i in range(G)])
    xi = xg.reshape(N, Cin, H, W)
    conv = lax.conv_general_dilated(
        xi, w_oihw, window_strides=(1, 1), padding='SAME',
        dimension_numbers=('NCHW', 'OIHW', 'NCHW'),
        precision=lax.Precision.HIGHEST)
    conv = conv + bias[None, :, None, None]
    conv = jnp.maximum(conv, 0.0)
    pooled = lax.reduce_window(conv, -jnp.inf, lax.max,
                               (1, 1, 2, 2), (1, 1, 2, 2), 'VALID')
    out = pooled.reshape(G, B, K, Cout, Ho, Wo)
    out = jnp.stack([jnp.rot90(out[i], k=G - i, axes=(-2, -1)) for i in range(G)])
    return jnp.mean(out, axis=0)


if __name__ == "__main__":
    key = jax.random.PRNGKey(0)
    kx, kw, kb = jax.random.split(key, 3)
    # deterministic synthetic parameters (Conv2d(4, 8, kernel_size=3, padding=1))
    x = jax.random.normal(kx, (B, K, Cin, H, W), jnp.float32)
    w = 0.1 * jax.random.normal(kw, (Cout, Cin, 3, 3), jnp.float32)
    b = 0.1 * jax.random.normal(kb, (Cout,), jnp.float32)

    out = jax.block_until_ready(equi_operator_forward(x, w, b))
    ref = jax.block_until_ready(reference_forward(x, w, b))

    assert out.shape == (B, K, Cout, Ho, Wo), out.shape
    np.testing.assert_allclose(np.asarray(out), np.asarray(ref),
                               rtol=1e-4, atol=1e-4)
    print("KERNEL_OK")
</pallas_src>

<mosaic_0001>
module attributes {stable_mosaic.version = 11 : i64} {
  func.func @conv_relu_pool_kernel(%arg0: i32, %arg1: memref<36x3072xf32, #tpu.memory_space<vmem>>, %arg2: memref<8x36xf32, #tpu.memory_space<vmem>>, %arg3: memref<8x1xf32, #tpu.memory_space<vmem>>, %arg4: memref<8x768xf32, #tpu.memory_space<vmem>>) attributes {dimension_semantics = [#tpu.dimension_semantics<parallel>], iteration_bounds = array<i64: 2>, scalar_prefetch = 0 : i64, scratch_operands = 0 : i64, tpu.core_type = #tpu.core_type<tc>, window_params = [{transform_indices = @transform_0, window_bounds = array<i64: 36, 3072>}, {pipeline_mode = #tpu.pipeline_mode<synchronous>, transform_indices = @transform_1, window_bounds = array<i64: 8, 36>}, {pipeline_mode = #tpu.pipeline_mode<synchronous>, transform_indices = @transform_2, window_bounds = array<i64: 8, 1>}, {transform_indices = @transform_3, window_bounds = array<i64: 8, 768>}]} {
    %c0 = arith.constant 0 : index
    %c0_0 = arith.constant 0 : index
    %0 = vector.load %arg2[%c0, %c0_0] : memref<8x36xf32, #tpu.memory_space<vmem>>, vector<8x36xf32>
    %c0_1 = arith.constant 0 : index
    %c0_2 = arith.constant 0 : index
    %1 = vector.load %arg1[%c0_1, %c0_2] : memref<36x3072xf32, #tpu.memory_space<vmem>>, vector<36x3072xf32>
    %cst = arith.constant dense<0.000000e+00> : vector<8x3072xf32>
    %2 = tpu.matmul %0, %1, %cst {dimension_numbers = #tpu.dot_dimension_numbers<[1], [0], [0], [1], [0, 0, 1, 1], [], []>, precision = #tpu.contract_precision<fp32>} : vector<8x36xf32>, vector<36x3072xf32>, vector<8x3072xf32> -> vector<8x3072xf32>
    %c0_3 = arith.constant 0 : index
    %c0_4 = arith.constant 0 : index
    %3 = vector.load %arg3[%c0_3, %c0_4] : memref<8x1xf32, #tpu.memory_space<vmem>>, vector<8x1xf32>
    %4 = vector.broadcast %3 : vector<8x1xf32> to vector<8x3072xf32>
    %5 = arith.addf %2, %4 : vector<8x3072xf32>
    %cst_5 = arith.constant 0.000000e+00 : f32
    %6 = vector.broadcast %cst_5 : f32 to vector<8x3072xf32>
    %7 = arith.maximumf %5, %6 : vector<8x3072xf32>
    %8 = vector.extract_strided_slice %7 {offsets = [0, 0], sizes = [8, 768], strides = [1, 1]} : vector<8x3072xf32> to vector<8x768xf32>
    %9 = vector.extract_strided_slice %7 {offsets = [0, 768], sizes = [8, 768], strides = [1, 1]} : vector<8x3072xf32> to vector<8x768xf32>
    %10 = arith.maximumf %8, %9 : vector<8x768xf32>
    %11 = vector.extract_strided_slice %7 {offsets = [0, 1536], sizes = [8, 768], strides = [1, 1]} : vector<8x3072xf32> to vector<8x768xf32>
    %12 = arith.maximumf %10, %11 : vector<8x768xf32>
    %13 = vector.extract_strided_slice %7 {offsets = [0, 2304], sizes = [8, 768], strides = [1, 1]} : vector<8x3072xf32> to vector<8x768xf32>
    %14 = arith.maximumf %12, %13 : vector<8x768xf32>
    %c0_6 = arith.constant 0 : index
    %c0_7 = arith.constant 0 : index
    %15 = vector.load %arg4[%c0_6, %c0_7] : memref<8x768xf32, #tpu.memory_space<vmem>>, vector<8x768xf32>
    tpu.vector_store %arg4[%c0_6, %c0_7], %14 {strides = array<i32>} : memref<8x768xf32, #tpu.memory_space<vmem>>, vector<8x768xf32>,
    return
  }
  func.func @transform_0(%arg0: i32) -> (i32, i32) {
    %c0_i32 = arith.constant 0 : i32
    %c0_i32_0 = arith.constant 0 : i32
    return %c0_i32, %arg0 : i32, i32
  }
  func.func @transform_1(%arg0: i32) -> (i32, i32) {
    %c0_i32 = arith.constant 0 : i32
    %c0_i32_0 = arith.constant 0 : i32
    %c0_i32_1 = arith.constant 0 : i32
    return %c0_i32, %c0_i32_0 : i32, i32
  }
  func.func @transform_2(%arg0: i32) -> (i32, i32) {
    %c0_i32 = arith.constant 0 : i32
    %c0_i32_0 = arith.constant 0 : i32
    %c0_i32_1 = arith.constant 0 : i32
    return %c0_i32, %c0_i32_0 : i32, i32
  }
  func.func @transform_3(%arg0: i32) -> (i32, i32) {
    %c0_i32 = arith.constant 0 : i32
    %c0_i32_0 = arith.constant 0 : i32
    return %c0_i32, %arg0 : i32, i32
  }
}

</mosaic_0001>

<bundles_post_ra>
// kernel: equi_operator_forward.1
= control target key start
LH: loop header
LB: loop body
LE: loop exit
PB: predicated region body
PF: predicated region fallthrough
CT: control target
= control target key end

     0   :  { %s8378_s12 = smov 0   ;;  %s8380_s13 = smov 0   ;;  %s10523_s0 = inlined_call_operand.vmem [shape: f32[36,6144], index: 0, kind: input, shape index: {}]   ;;  %s10524_s1 = inlined_call_operand.vmem [shape: f32[8,36], index: 1, kind: input, shape index: {}]   ;;  %s10525_s2 = inlined_call_operand.vmem [shape: f32[8,1], index: 2, kind: input, shape index: {}]   ;;  %s10526_s3 = inlined_call_operand.vmem [shape: f32[8,1536], index: 3, kind: output, shape index: {}]  }
   0x1   :  { %s8382_s14 = smov 0  }
   0x2 LB: > { %s7573_s15 = sadd.s32 4294967295, %s8354_s14   ;;  %s8395_s16 = sadd.s32 1, %s8354_s14   ;;  %s8354_s14 = sphi %s8382_s14, %s10754_s14   ;;  %s8350_s13 = sphi %s8380_s13, %s10753_s13   ;;  %s8346_s12 = sphi %s8378_s12, %s10752_s12  }
   0x3   : > { %s17_s17 = ssub.s32 %s8354_s14, %s8395_s16  ;;  %s20_s18 = sadd.s32 1, %s8350_s13 }
   0x4   : > { %p18_p0 = scmp.eq.s32.totalorder %s17_s17, 0  ;;  %p27_p1 = scmp.ne.s32.totalorder %s8350_s13, %s8346_s12 }
   0x5   : > { %p28_p2 = scmp.eq.s32.totalorder %s8354_s14, 0  ;;  %p7576_p4 = scmp.ge.s32.totalorder %s8354_s14, 2 }
   0x6   : > { %s8404_s19 = scalar_select %p18_p0, %s8350_s13, %s20_s18  }
   0x7   : > { %p29_p3 = por %p28_p2, %p27_p1  ;;  %127 = sbr.rel (%p7576_p4) target bundleno = 79 (0x4f), region = 24 }
   0xe   : > { %130 = sbr.rel (!%p29_p3) target bundleno = 79 (0x4f), region = 28  ;;  %s132_s20 = sand.u32 (%p29_p3), 1, %s8350_s13  }
   0xf   : > { %s7582_s21 = smul.u32 (%p29_p3), 192, %s8354_s14 }
  0x10   : > { %s8303_s22 = smul.u32 (%p29_p3), 960, %s132_s20 }
  0x11   : > { %s8412_s25 = scalar_lea.vmem (%p29_p3), %s10523_s0, %s7582_s21 }
  0x12   : > { %v150_v0 = vld [vmem:[%s8412_s25] sm:$0xff] (%p29_p3)  ;;  %v152_v1 = vld [vmem:[%s8412_s25 + $0x8] sm:$0xff] (%p29_p3)  ;;  %v154_v2 = vld [vmem:[%s8412_s25 + $0x10] sm:$0xff] (%p29_p3)  ;;  %s8417_s26 = scalar_lea.vmem (%p29_p3), [#allocation2], %s8303_s22 }
  0x13   : > { %151 = vst [vmem:[%s8417_s26] sm:$0xff] (%p29_p3), %v150_v0  ;;  %153 = vst [vmem:[%s8417_s26 + $0x8] sm:$0xff] (%p29_p3), %v152_v1  ;;  %v156_v3 = vld [vmem:[%s8412_s25 + $0x18] sm:$0xff] (%p29_p3)  ;;  %v158_v4 = vld [vmem:[%s8412_s25 + $0x20] sm:$0xff] (%p29_p3) }
  0x14   : > { %155 = vst [vmem:[%s8417_s26 + $0x10] sm:$0xff] (%p29_p3), %v154_v2  ;;  %v160_v5 = vld [vmem:[%s8412_s25 + $0x28] sm:$0xff] (%p29_p3)  ;;  %157 = vst [vmem:[%s8417_s26 + $0x18] sm:$0xff] (%p29_p3), %v156_v3  ;;  %v162_v6 = vld [vmem:[%s8412_s25 + $0x30] sm:$0xff] (%p29_p3) }
  0x15   : > { %159 = vst [vmem:[%s8417_s26 + $0x20] sm:$0xff] %v158_v4  ;;  %161 = vst [vmem:[%s8417_s26 + $0x28] sm:$0xff] %v160_v5  ;;  %v164_v7 = vld [vmem:[%s8412_s25 + $0x38] sm:$0xff]  ;;  %v166_v8 = vld [vmem:[%s8412_s25 + $0x40] sm:$0xff] }
  0x16   : > { %163 = vst [vmem:[%s8417_s26 + $0x30] sm:$0xff] %v162_v6  ;;  %165 = vst [vmem:[%s8417_s26 + $0x38] sm:$0xff] %v164_v7  ;;  %v168_v9 = vld [vmem:[%s8412_s25 + $0x48] sm:$0xff]  ;;  %v170_v10 = vld [vmem:[%s8412_s25 + $0x50] sm:$0xff] }
  0x17   : > { %167 = vst [vmem:[%s8417_s26 + $0x40] sm:$0xff] %v166_v8  ;;  %v172_v11 = vld [vmem:[%s8412_s25 + $0x58] sm:$0xff]  ;;  %169 = vst [vmem:[%s8417_s26 + $0x48] sm:$0xff] %v168_v9  ;;  %v174_v12 = vld [vmem:[%s8412_s25 + $0x60] sm:$0xff] }
  0x18   : > { %171 = vst [vmem:[%s8417_s26 + $0x50] sm:$0xff] %v170_v10  ;;  %173 = vst [vmem:[%s8417_s26 + $0x58] sm:$0xff] %v172_v11  ;;  %v176_v13 = vld [vmem:[%s8412_s25 + $0x68] sm:$0xff]  ;;  %v178_v14 = vld [vmem:[%s8412_s25 + $0x70] sm:$0xff] }
  0x19   : > { %175 = vst [vmem:[%s8417_s26 + $0x60] sm:$0xff] %v174_v12  ;;  %177 = vst [vmem:[%s8417_s26 + $0x68] sm:$0xff] %v176_v13  ;;  %v180_v15 = vld [vmem:[%s8412_s25 + $0x78] sm:$0xff]  ;;  %v182_v16 = vld [vmem:[%s8412_s25 + $0x80] sm:$0xff] }
  0x1a   : > { %179 = vst [vmem:[%s8417_s26 + $0x70] sm:$0xff] %v178_v14  ;;  %v184_v17 = vld [vmem:[%s8412_s25 + $0x88] sm:$0xff]  ;;  %181 = vst [vmem:[%s8417_s26 + $0x78] sm:$0xff] %v180_v15  ;;  %v186_v18 = vld [vmem:[%s8412_s25 + $0x90] sm:$0xff] }
  0x1b   : > { %183 = vst [vmem:[%s8417_s26 + $0x80] sm:$0xff] %v182_v16  ;;  %185 = vst [vmem:[%s8417_s26 + $0x88] sm:$0xff] %v184_v17  ;;  %v188_v19 = vld [vmem:[%s8412_s25 + $0x98] sm:$0xff]  ;;  %v190_v20 = vld [vmem:[%s8412_s25 + $0xa0] sm:$0xff] }
  0x1c   : > { %187 = vst [vmem:[%s8417_s26 + $0x90] sm:$0xff] %v186_v18  ;;  %189 = vst [vmem:[%s8417_s26 + $0x98] sm:$0xff] %v188_v19  ;;  %v192_v21 = vld [vmem:[%s8412_s25 + $0xa8] sm:$0xff]  ;;  %v194_v22 = vld [vmem:[%s8412_s25 + $0xb0] sm:$0xff] }
  0x1d   : > { %191 = vst [vmem:[%s8417_s26 + $0xa0] sm:$0xff] %v190_v20  ;;  %v196_v23 = vld [vmem:[%s8412_s25 + $0xb8] sm:$0xff]  ;;  %193 = vst [vmem:[%s8417_s26 + $0xa8] sm:$0xff] %v192_v21  ;;  %v198_v24 = vld [vmem:[%s8412_s25 + $0x180] sm:$0xff] }
  0x1e   : > { %195 = vst [vmem:[%s8417_s26 + $0xb0] sm:$0xff] %v194_v22  ;;  %197 = vst [vmem:[%s8417_s26 + $0xb8] sm:$0xff] %v196_v23  ;;  %v200_v25 = vld [vmem:[%s8412_s25 + $0x188] sm:$0xff]  ;;  %v202_v26 = vld [vmem:[%s8412_s25 + $0x190] sm:$0xff] }
  0x1f   : > { %199 = vst [vmem:[%s8417_s26 + $0xc0] sm:$0xff] %v198_v24  ;;  %201 = vst [vmem:[%s8417_s26 + $0xc8] sm:$0xff] %v200_v25  ;;  %v204_v27 = vld [vmem:[%s8412_s25 + $0x198] sm:$0xff]  ;;  %v206_v28 = vld [vmem:[%s8412_s25 + $0x1a0] sm:$0xff] }
  0x20   : > { %203 = vst [vmem:[%s8417_s26 + $0xd0] sm:$0xff] %v202_v26  ;;  %v208_v29 = vld [vmem:[%s8412_s25 + $0x1a8] sm:$0xff]  ;;  %205 = vst [vmem:[%s8417_s26 + $0xd8] sm:$0xff] %v204_v27  ;;  %v210_v30 = vld [vmem:[%s8412_s25 + $0x1b0] sm:$0xff] }
  0x21   : > { %207 = vst [vmem:[%s8417_s26 + $0xe0] sm:$0xff] %v206_v28  ;;  %209 = vst [vmem:[%s8417_s26 + $0xe8] sm:$0xff] %v208_v29  ;;  %v212_v31 = vld [vmem:[%s8412_s25 + $0x1b8] sm:$0xff]  ;;  %v214_v32 = vld [vmem:[%s8412_s25 + $0x1c0] sm:$0xff] }
  0x22   : > { %211 = vst [vmem:[%s8417_s26 + $0xf0] sm:$0xff] %v210_v30  ;;  %213 = vst [vmem:[%s8417_s26 + $0xf8] sm:$0xff] %v212_v31  ;;  %v216_v33 = vld [vmem:[%s8412_s25 + $0x1c8] sm:$0xff]  ;;  %v218_v34 = vld [vmem:[%s8412_s25 + $0x1d0] sm:$0xff] }
  0x23   : > { %215 = vst [vmem:[%s8417_s26 + $0x100] sm:$0xff] %v214_v32  ;;  %v220_v35 = vld [vmem:[%s8412_s25 + $0x1d8] sm:$0xff]  ;;  %217 = vst [vmem:[%s8417_s26 + $0x108] sm:$0xff] %v216_v33  ;;  %v222_v36 = vld [vmem:[%s8412_s25 + $0x1e0] sm:$0xff] }
  0x24   : > { %219 = vst [vmem:[%s8417_s26 + $0x110] sm:$0xff] %v218_v34  ;;  %221 = vst [vmem:[%s8417_s26 + $0x118] sm:$0xff] %v220_v35  ;;  %v224_v37 = vld [vmem:[%s8412_s25 + $0x1e8] sm:$0xff]  ;;  %v226_v38 = vld [vmem:[%s8412_s25 + $0x1f0] sm:$0xff] }
  0x25   : > { %223 = vst [vmem:[%s8417_s26 + $0x120] sm:$0xff] %v222_v36  ;;  %225 = vst [vmem:[%s8417_s26 + $0x128] sm:$0xff] %v224_v37  ;;  %v228_v39 = vld [vmem:[%s8412_s25 + $0x1f8] sm:$0xff]  ;;  %v230_v40 = vld [vmem:[%s8412_s25 + $0x200] sm:$0xff] }
  0x26   : > { %227 = vst [vmem:[%s8417_s26 + $0x130] sm:$0xff] %v226_v38  ;;  %v232_v41 = vld [vmem:[%s8412_s25 + $0x208] sm:$0xff]  ;;  %229 = vst [vmem:[%s8417_s26 + $0x138] sm:$0xff] %v228_v39  ;;  %v234_v42 = vld [vmem:[%s8412_s25 + $0x210] sm:$0xff] }
  0x27   : > { %231 = vst [vmem:[%s8417_s26 + $0x140] sm:$0xff] %v230_v40  ;;  %233 = vst [vmem:[%s8417_s26 + $0x148] sm:$0xff] %v232_v41  ;;  %v236_v43 = vld [vmem:[%s8412_s25 + $0x218] sm:$0xff]  ;;  %v238_v44 = vld [vmem:[%s8412_s25 + $0x220] sm:$0xff] }
  0x28   : > { %235 = vst [vmem:[%s8417_s26 + $0x150] sm:$0xff] %v234_v42  ;;  %237 = vst [vmem:[%s8417_s26 + $0x158] sm:$0xff] %v236_v43  ;;  %v240_v45 = vld [vmem:[%s8412_s25 + $0x228] sm:$0xff]  ;;  %v242_v46 = vld [vmem:[%s8412_s25 + $0x230] sm:$0xff] }
  0x29   : > { %239 = vst [vmem:[%s8417_s26 + $0x160] sm:$0xff] %v238_v44  ;;  %v244_v47 = vld [vmem:[%s8412_s25 + $0x238] sm:$0xff]  ;;  %241 = vst [vmem:[%s8417_s26 + $0x168] sm:$0xff] %v240_v45  ;;  %v246_v48 = vld [vmem:[%s8412_s25 + $0x300] sm:$0xff] }
  0x2a   : > { %243 = vst [vmem:[%s8417_s26 + $0x170] sm:$0xff] %v242_v46  ;;  %245 = vst [vmem:[%s8417_s26 + $0x178] sm:$0xff] %v244_v47  ;;  %v248_v49 = vld [vmem:[%s8412_s25 + $0x308] sm:$0xff]  ;;  %v250_v50 = vld [vmem:[%s8412_s25 + $0x310] sm:$0xff] }
  0x2b   : > { %247 = vst [vmem:[%s8417_s26 + $0x180] sm:$0xff] %v246_v48  ;;  %249 = vst [vmem:[%s8417_s26 + $0x188] sm:$0xff] %v248_v49  ;;  %v252_v51 = vld [vmem:[%s8412_s25 + $0x318] sm:$0xff]  ;;  %v254_v52 = vld [vmem:[%s8412_s25 + $0x320] sm:$0xff] }
  0x2c   : > { %251 = vst [vmem:[%s8417_s26 + $0x190] sm:$0xff] %v250_v50  ;;  %v256_v53 = vld [vmem:[%s8412_s25 + $0x328] sm:$0xff]  ;;  %253 = vst [vmem:[%s8417_s26 + $0x198] sm:$0xff] %v252_v51  ;;  %v258_v54 = vld [vmem:[%s8412_s25 + $0x330] sm:$0xff] }
  0x2d   : > { %255 = vst [vmem:[%s8417_s26 + $0x1a0] sm:$0xff] %v254_v52  ;;  %257 = vst [vmem:[%s8417_s26 + $0x1a8] sm:$0xff] %v256_v53  ;;  %v260_v55 = vld [vmem:[%s8412_s25 + $0x338] sm:$0xff]  ;;  %v262_v56 = vld [vmem:[%s8412_s25 + $0x340] sm:$0xff] }
  0x2e   : > { %259 = vst [vmem:[%s8417_s26 + $0x1b0] sm:$0xff] %v258_v54  ;;  %261 = vst [vmem:[%s8417_s26 + $0x1b8] sm:$0xff] %v260_v55  ;;  %v264_v57 = vld [vmem:[%s8412_s25 + $0x348] sm:$0xff]  ;;  %v266_v58 = vld [vmem:[%s8412_s25 + $0x350] sm:$0xff] }
  0x2f   : > { %263 = vst [vmem:[%s8417_s26 + $0x1c0] sm:$0xff] %v262_v56  ;;  %v268_v59 = vld [vmem:[%s8412_s25 + $0x358] sm:$0xff]  ;;  %265 = vst [vmem:[%s8417_s26 + $0x1c8] sm:$0xff] %v264_v57  ;;  %v270_v60 = vld [vmem:[%s8412_s25 + $0x360] sm:$0xff] }
  0x30   : > { %267 = vst [vmem:[%s8417_s26 + $0x1d0] sm:$0xff] %v266_v58  ;;  %269 = vst [vmem:[%s8417_s26 + $0x1d8] sm:$0xff] %v268_v59  ;;  %v272_v61 = vld [vmem:[%s8412_s25 + $0x368] sm:$0xff]  ;;  %v274_v62 = vld [vmem:[%s8412_s25 + $0x370] sm:$0xff] }
  0x31   : > { %271 = vst [vmem:[%s8417_s26 + $0x1e0] sm:$0xff] %v270_v60  ;;  %273 = vst [vmem:[%s8417_s26 + $0x1e8] sm:$0xff] %v272_v61  ;;  %v276_v63 = vld [vmem:[%s8412_s25 + $0x378] sm:$0xff]  ;;  %v278_v0 = vld [vmem:[%s8412_s25 + $0x380] sm:$0xff] }
  0x32   : > { %275 = vst [vmem:[%s8417_s26 + $0x1f0] sm:$0xff] %v274_v62  ;;  %v280_v1 = vld [vmem:[%s8412_s25 + $0x388] sm:$0xff]  ;;  %277 = vst [vmem:[%s8417_s26 + $0x1f8] sm:$0xff] %v276_v63  ;;  %v282_v2 = vld [vmem:[%s8412_s25 + $0x390] sm:$0xff] }
  0x33   : > { %279 = vst [vmem:[%s8417_s26 + $0x200] sm:$0xff] %v278_v0  ;;  %281 = vst [vmem:[%s8417_s26 + $0x208] sm:$0xff] %v280_v1  ;;  %v284_v3 = vld [vmem:[%s8412_s25 + $0x398] sm:$0xff]  ;;  %v286_v4 = vld [vmem:[%s8412_s25 + $0x3a0] sm:$0xff] }
  0x34   : > { %283 = vst [vmem:[%s8417_s26 + $0x210] sm:$0xff] %v282_v2  ;;  %285 = vst [vmem:[%s8417_s26 + $0x218] sm:$0xff] %v284_v3  ;;  %v288_v5 = vld [vmem:[%s8412_s25 + $0x3a8] sm:$0xff]  ;;  %v290_v6 = vld [vmem:[%s8412_s25 + $0x3b0] sm:$0xff] }
  0x35   : > { %287 = vst [vmem:[%s8417_s26 + $0x220] sm:$0xff] %v286_v4  ;;  %v292_v7 = vld [vmem:[%s8412_s25 + $0x3b8] sm:$0xff]  ;;  %289 = vst [vmem:[%s8417_s26 + $0x228] sm:$0xff] %v288_v5  ;;  %v294_v8 = vld [vmem:[%s8412_s25 + $0x480] sm:$0xff] }
  0x36   : > { %291 = vst [vmem:[%s8417_s26 + $0x230] sm:$0xff] %v290_v6  ;;  %293 = vst [vmem:[%s8417_s26 + $0x238] sm:$0xff] %v292_v7  ;;  %v296_v9 = vld [vmem:[%s8412_s25 + $0x488] sm:$0xff]  ;;  %v298_v10 = vld [vmem:[%s8412_s25 + $0x490] sm:$0xff] }
  0x37   : > { %295 = vst [vmem:[%s8417_s26 + $0x240] sm:$0xff] %v294_v8  ;;  %297 = vst [vmem:[%s8417_s26 + $0x248] sm:$0xff] %v296_v9  ;;  %v300_v11 = vld [vmem:[%s8412_s25 + $0x498] sm:$0xff]  ;;  %v302_v12 = vld [vmem:[%s8412_s25 + $0x4a0] sm:$0xff] }
  0x38   : > { %299 = vst [vmem:[%s8417_s26 + $0x250] sm:$0xff] %v298_v10  ;;  %v304_v13 = vld [vmem:[%s8412_s25 + $0x4a8] sm:$0xff]  ;;  %301 = vst [vmem:[%s8417_s26 + $0x258] sm:$0xff] %v300_v11  ;;  %v306_v14 = vld [vmem:[%s8412_s25 + $0x4b0] sm:$0xff] }
  0x39   : > { %303 = vst [vmem:[%s8417_s26 + $0x260] sm:$0xff] %v302_v12  ;;  %305 = vst [vmem:[%s8417_s26 + $0x268] sm:$0xff] %v304_v13  ;;  %v308_v15 = vld [vmem:[%s8412_s25 + $0x4b8] sm:$0xff]  ;;  %v310_v16 = vld [vmem:[%s8412_s25 + $0x4c0] sm:$0xff] }
  0x3a   : > { %307 = vst [vmem:[%s8417_s26 + $0x270] sm:$0xff] %v306_v14  ;;  %309 = vst [vmem:[%s8417_s26 + $0x278] sm:$0xff] %v308_v15  ;;  %v312_v17 = vld [vmem:[%s8412_s25 + $0x4c8] sm:$0xff]  ;;  %v314_v18 = vld [vmem:[%s8412_s25 + $0x4d0] sm:$0xff] }
  0x3b   : > { %311 = vst [vmem:[%s8417_s26 + $0x280] sm:$0xff] %v310_v16  ;;  %v316_v19 = vld [vmem:[%s8412_s25 + $0x4d8] sm:$0xff]  ;;  %313 = vst [vmem:[%s8417_s26 + $0x288] sm:$0xff] %v312_v17  ;;  %v318_v20 = vld [vmem:[%s8412_s25 + $0x4e0] sm:$0xff] }
  0x3c   : > { %315 = vst [vmem:[%s8417_s26 + $0x290] sm:$0xff] %v314_v18  ;;  %317 = vst [vmem:[%s8417_s26 + $0x298] sm:$0xff] %v316_v19  ;;  %v320_v21 = vld [vmem:[%s8412_s25 + $0x4e8] sm:$0xff]  ;;  %v322_v22 = vld [vmem:[%s8412_s25 + $0x4f0] sm:$0xff] }
  0x3d   : > { %319 = vst [vmem:[%s8417_s26 + $0x2a0] sm:$0xff] %v318_v20  ;;  %321 = vst [vmem:[%s8417_s26 + $0x2a8] sm:$0xff] %v320_v21  ;;  %v324_v23 = vld [vmem:[%s8412_s25 + $0x4f8] sm:$0xff]  ;;  %v326_v24 = vld [vmem:[%s8412_s25 + $0x500] sm:$0xff] }
  0x3e   : > { %323 = vst [vmem:[%s8417_s26 + $0x2b0] sm:$0xff] %v322_v22  ;;  %v328_v25 = vld [vmem:[%s8412_s25 + $0x508] sm:$0xff]  ;;  %325 = vst [vmem:[%s8417_s26 + $0x2b8] sm:$0xff] %v324_v23  ;;  %v330_v26 = vld [vmem:[%s8412_s25 + $0x510] sm:$0xff] }
  0x3f   : > { %327 = vst [vmem:[%s8417_s26 + $0x2c0] sm:$0xff] %v326_v24  ;;  %329 = vst [vmem:[%s8417_s26 + $0x2c8] sm:$0xff] %v328_v25  ;;  %v332_v27 = vld [vmem:[%s8412_s25 + $0x518] sm:$0xff]  ;;  %v334_v28 = vld [vmem:[%s8412_s25 + $0x520] sm:$0xff] }
  0x40   : > { %331 = vst [vmem:[%s8417_s26 + $0x2d0] sm:$0xff] %v330_v26  ;;  %333 = vst [vmem:[%s8417_s26 + $0x2d8] sm:$0xff] %v332_v27  ;;  %v336_v29 = vld [vmem:[%s8412_s25 + $0x528] sm:$0xff]  ;;  %v338_v30 = vld [vmem:[%s8412_s25 + $0x530] sm:$0xff] }
  0x41   : > { %335 = vst [vmem:[%s8417_s26 + $0x2e0] sm:$0xff] %v334_v28  ;;  %v340_v31 = vld [vmem:[%s8412_s25 + $0x538] sm:$0xff]  ;;  %337 = vst [vmem:[%s8417_s26 + $0x2e8] sm:$0xff] %v336_v29  ;;  %v342_v32 = vld [vmem:[%s8412_s25 + $0x600] sm:$0xff] }
  0x42   : > { %339 = vst [vmem:[%s8417_s26 + $0x2f0] sm:$0xff] %v338_v30  ;;  %341 = vst [vmem:[%s8417_s26 + $0x2f8] sm:$0xff] %v340_v31  ;;  %v344_v33 = vld [vmem:[%s8412_s25 + $0x608] sm:$0xff]  ;;  %v346_v34 = vld [vmem:[%s8412_s25 + $0x610] sm:$0xff] }
  0x43   : > { %343 = vst [vmem:[%s8417_s26 + $0x300] sm:$0xff] %v342_v32  ;;  %345 = vst [vmem:[%s8417_s26 + $0x308] sm:$0xff] %v344_v33  ;;  %v348_v35 = vld [vmem:[%s8412_s25 + $0x618] sm:$0xff]  ;;  %v350_v36 = vld [vmem:[%s8412_s25 + $0x620] sm:$0xff] }
  0x44   : > { %347 = vst [vmem:[%s8417_s26 + $0x310] sm:$0xff] %v346_v34  ;;  %v352_v37 = vld [vmem:[%s8412_s25 + $0x628] sm:$0xff]  ;;  %349 = vst [vmem:[%s8417_s26 + $0x318] sm:$0xff] %v348_v35  ;;  %v354_v38 = vld [vmem:[%s8412_s25 + $0x630] sm:$0xff] }
  0x45   : > { %351 = vst [vmem:[%s8417_s26 + $0x320] sm:$0xff] %v350_v36  ;;  %353 = vst [vmem:[%s8417_s26 + $0x328] sm:$0xff] %v352_v37  ;;  %v356_v39 = vld [vmem:[%s8412_s25 + $0x638] sm:$0xff]  ;;  %v358_v40 = vld [vmem:[%s8412_s25 + $0x640] sm:$0xff] }
  0x46   : > { %355 = vst [vmem:[%s8417_s26 + $0x330] sm:$0xff] %v354_v38  ;;  %357 = vst [vmem:[%s8417_s26 + $0x338] sm:$0xff] %v356_v39  ;;  %v360_v41 = vld [vmem:[%s8412_s25 + $0x648] sm:$0xff]  ;;  %v362_v42 = vld [vmem:[%s8412_s25 + $0x650] sm:$0xff] }
  0x47   : > { %359 = vst [vmem:[%s8417_s26 + $0x340] sm:$0xff] %v358_v40  ;;  %v364_v43 = vld [vmem:[%s8412_s25 + $0x658] sm:$0xff]  ;;  %361 = vst [vmem:[%s8417_s26 + $0x348] sm:$0xff] %v360_v41  ;;  %v366_v44 = vld [vmem:[%s8412_s25 + $0x660] sm:$0xff] }
  0x48   : > { %363 = vst [vmem:[%s8417_s26 + $0x350] sm:$0xff] %v362_v42  ;;  %365 = vst [vmem:[%s8417_s26 + $0x358] sm:$0xff] %v364_v43  ;;  %v368_v45 = vld [vmem:[%s8412_s25 + $0x668] sm:$0xff]  ;;  %v370_v46 = vld [vmem:[%s8412_s25 + $0x670] sm:$0xff] }
  0x49   : > { %367 = vst [vmem:[%s8417_s26 + $0x360] sm:$0xff] %v366_v44  ;;  %369 = vst [vmem:[%s8417_s26 + $0x368] sm:$0xff] %v368_v45  ;;  %v372_v47 = vld [vmem:[%s8412_s25 + $0x678] sm:$0xff]  ;;  %v374_v48 = vld [vmem:[%s8412_s25 + $0x680] sm:$0xff] }
  0x4a   : > { %371 = vst [vmem:[%s8417_s26 + $0x370] sm:$0xff] %v370_v46  ;;  %v376_v49 = vld [vmem:[%s8412_s25 + $0x688] sm:$0xff]  ;;  %373 = vst [vmem:[%s8417_s26 + $0x378] sm:$0xff] %v372_v47  ;;  %v378_v50 = vld [vmem:[%s8412_s25 + $0x690] sm:$0xff] }
  0x4b   : > { %375 = vst [vmem:[%s8417_s26 + $0x380] sm:$0xff] %v374_v48  ;;  %377 = vst [vmem:[%s8417_s26 + $0x388] sm:$0xff] %v376_v49  ;;  %v380_v51 = vld [vmem:[%s8412_s25 + $0x698] sm:$0xff]  ;;  %v382_v52 = vld [vmem:[%s8412_s25 + $0x6a0] sm:$0xff] }
  0x4c   : > { %379 = vst [vmem:[%s8417_s26 + $0x390] sm:$0xff] %v378_v50  ;;  %381 = vst [vmem:[%s8417_s26 + $0x398] sm:$0xff] %v380_v51  ;;  %v384_v53 = vld [vmem:[%s8412_s25 + $0x6a8] sm:$0xff]  ;;  %v386_v54 = vld [vmem:[%s8412_s25 + $0x6b0] sm:$0xff] }
  0x4d   : > { %383 = vst [vmem:[%s8417_s26 + $0x3a0] sm:$0xff] %v382_v52  ;;  %v388_v55 = vld [vmem:[%s8412_s25 + $0x6b8] sm:$0xff]  ;;  %385 = vst [vmem:[%s8417_s26 + $0x3a8] sm:$0xff] %v384_v53 }
  0x4e   : > { %387 = vst [vmem:[%s8417_s26 + $0x3b0] sm:$0xff] %v386_v54  ;;  %389 = vst [vmem:[%s8417_s26 + $0x3b8] sm:$0xff] %v388_v55 }
  0x4f PF: > { %p7578_p5 = scmp.ge.s32.totalorder %s8354_s14, 1  ;;  %p394_p6 = scmp.lt.s32.totalorder %s8354_s14, 3 }
  0x51   : > { %p395_p7 = pnand %p7578_p5, %p394_p6 }
  0x53   : > { %398 = sbr.rel (%p395_p7) target bundleno = 726 (0x2d6), region = 51 }
  0x5a   : > { %s401_s27 = sand.u32 1, %s8346_s12   ;;  %v431_v56 = vld [vmem:[%s10524_s1] sm:$0xff]  ;;  %vm558_vm0 = vcmask 293888   ;;  %v10548_v57 = vmov 0.0   ;;  %vm562_vm1 = vcmask 1043456   ;;  %s425_s7 = smul.u32 6, %s7573_s15 }
  0x5b   : > { %s8304_s30 = smul.u32 960, %s401_s27  ;;  %709 = vmatprep.mubr.f32.mxu0 %v10548_v57  ;;  %1278 = vmatprep.mubr.f32.mxu1 %v10548_v57  ;;  %v560_v58 = vsel %vm558_vm0, %v431_v56, 0 }
  0x5c   : > { %v8664_v59 = vand.u32 4294901760, %v560_v58  ;;  %p426_p8 = scmp.lt.s32.totalorder %s425_s7, 11 }
  0x5d   : > { %s8666_s4 = scalar_lea.vmem [#allocation2], %s8304_s30 }
  0x5e   : > { %v433_v60 = vld [vmem:[%s8666_s4 + $0x8] sm:$0xff]  ;;  %v435_v62 = vld [vmem:[%s8666_s4 + $0x18] sm:$0xff]  ;;  %v432_v3 = vld [vmem:[%s8666_s4] sm:$0xff]  ;;  %v8678_v11 = vsub.f32 %v560_v58, %v8664_v59  ;;  %s10756_s7 = smov (!%p426_p8, %s425_s7), 11 }
  0x5f   : > { %v457_v61 = vld [vmem:[%s8666_s4 + $0xc8] sm:$0xff]  ;;  %v635_v63 = vand.u32 4294901760, %v433_v60  ;;  %v459_v1 = vld [vmem:[%s8666_s4 + $0xd8] sm:$0xff]  ;;  %v1204_v2 = vand.u32 4294901760, %v435_v62  ;;  %v456_v4 = vld [vmem:[%s8666_s4 + $0xc0] sm:$0xff]  ;;  %v637_v6 = vand.u32 4294901760, %v432_v3 }
  0x60   : > { %v639_v0 = vand.u32 4294901760, %v457_v61  ;;  %v1208_v5 = vand.u32 4294901760, %v459_v1  ;;  %v641_v7 = vand.u32 4294901760, %v456_v4  ;;  %v434_v8 = vld [vmem:[%s8666_s4 + $0x10] sm:$0xff]  ;;  %v481_v10 = vld [vmem:[%s8666_s4 + $0x188] sm:$0xff]  ;;  %v483_v17 = vld [vmem:[%s8666_s4 + $0x198] sm:$0xff] }
  0x61   : > { %v458_v9 = vld [vmem:[%s8666_s4 + $0xd0] sm:$0xff]  ;;  %v8682_v13 = vsub.f32 %v433_v60, %v635_v63  ;;  %v8686_v15 = vsub.f32 %v435_v62, %v1204_v2  ;;  %v505_v16 = vld [vmem:[%s8666_s4 + $0x248] sm:$0xff]  ;;  %v507_v18 = vld [vmem:[%s8666_s4 + $0x258] sm:$0xff]  ;;  %v8697_v22 = vsub.f32 %v432_v3, %v637_v6  ;;  %v1206_v25 = vand.u32 4294901760, %v434_v8  ;;  %s7579_s8 = sshll.u32 %s10756_s7, 3 }
  0x62   : > { %v8680_v12 = vpack.c.bf16 %v639_v0, %v635_v63  ;;  %v8684_v14 = vsub.f32 %v457_v61, %v639_v0  ;;  %v8691_v19 = vpack.c.bf16 %v1208_v5, %v1204_v2  ;;  %v8693_v20 = vsub.f32 %v459_v1, %v1208_v5  ;;  %v480_v23 = vld [vmem:[%s8666_s4 + $0x180] sm:$0xff]  ;;  %v482_v33 = vld [vmem:[%s8666_s4 + $0x190] sm:$0xff]  ;;  %v529_v39 = vld [vmem:[%s8666_s4 + $0x308] sm:$0xf]  ;;  %s429_s11 = scalar_lea.vmem %s10526_s3, %s7579_s8 }
  0x63   : > { %v8695_v21 = vpack.c.bf16 %v641_v7, %v637_v6  ;;  %v8701_v24 = vsub.f32 %v456_v4, %v641_v7  ;;  %v1210_v26 = vand.u32 4294901760, %v458_v9  ;;  %v643_v27 = vand.u32 4294901760, %v481_v10  ;;  %v504_v28 = vld [vmem:[%s8666_s4 + $0x240] sm:$0xff]  ;;  %v506_v34 = vld [vmem:[%s8666_s4 + $0x250] sm:$0xff]  ;;  %v531_v40 = vld [vmem:[%s8666_s4 + $0x318] sm:$0xf] }
  0x64   : > { %7584 = vmatprep.subr.bf16.mxu0 %v8680_v12  ;;  %7632 = vmatprep.subr.bf16.mxu1 %v8691_v19  ;;  %v647_v29 = vand.u32 4294901760, %v505_v16  ;;  %v1212_v30 = vand.u32 4294901760, %v483_v17  ;;  %v1216_v31 = vand.u32 4294901760, %v507_v18  ;;  %v645_v32 = vand.u32 4294901760, %v480_v23  ;;  %v528_v41 = vld [vmem:[%s8666_s4 + $0x300] sm:$0xf] }
  0x65   : > { %7586 = vmatpush1.bf16.msra.mxu0 %v8695_v21  ;;  %v8708_v35 = vpack.c.bf16 %v1210_v26, %v1206_v25  ;;  %v8710_v36 = vsub.f32 %v434_v8, %v1206_v25  ;;  %v8712_v37 = vsub.f32 %v458_v9, %v1210_v26  ;;  %v8714_v38 = vsub.f32 %v481_v10, %v643_v27  ;;  %v530_v54 = vld [vmem:[%s8666_s4 + $0x310] sm:$0xf] }
  0x66   : > { %v8719_v42 = vpack.c.bf16 %v647_v29, %v643_v27  ;;  %v8721_v43 = vsub.f32 %v505_v16, %v647_v29  ;;  %v8723_v44 = vpack.c.bf16 %v1216_v31, %v1212_v30  ;;  %v8725_v45 = vsub.f32 %v483_v17, %v1212_v30 }
  0x67   : > { %7634 = vmatpush1.bf16.msra.mxu1 %v8708_v35  ;;  %v8728_v46 = vsub.f32 %v507_v18, %v1216_v31  ;;  %v649_v47 = vand.u32 4294901760, %v504_v28  ;;  %v8730_v48 = vsub.f32 %v480_v23, %v645_v32  ;;  %v1214_v49 = vand.u32 4294901760, %v482_v33 }
  0x68   : > { %7588 = vmatprep.subr.bf16.mxu0 %v8719_v42  ;;  %7636 = vmatprep.subr.bf16.mxu1 %v8723_v44  ;;  %v1218_v50 = vand.u32 4294901760, %v506_v34  ;;  %v8735_v51 = vsel %vm562_vm1, %v529_v39, 0  ;;  %v8738_v52 = vsel %vm562_vm1, %v531_v40, 0  ;;  %v564_v53 = vsel %vm562_vm1, %v528_v41, 0 }
  0x69   : > { %v8742_v55 = vpack.c.bf16 %v649_v47, %v645_v32  ;;  %v8744_v56 = vsub.f32 %v504_v28, %v649_v47  ;;  %v8746_v58 = vsub.f32 %v482_v33, %v1214_v49  ;;  %v8749_v60 = vand.u32 4294901760, %v8735_v51 }
  0x6a   : > { %v8751_v61 = vpack.c.bf16 %v1218_v50, %v1214_v49  ;;  %v8753_v62 = vsub.f32 %v506_v34, %v1218_v50  ;;  %v8756_v63 = vand.u32 4294901760, %v8738_v52  ;;  %v8758_v0 = vand.u32 4294901760, %v564_v53 }
  0x6b   : > { %7590 = vmatpush1.bf16.msra.mxu0 %v8742_v55  ;;  %v570_v1 = vsel %vm562_vm1, %v530_v54, 0  ;;  %v723_v2 = vand.u32 4294901760, %v8682_v13  ;;  %v735_v3 = vand.u32 4294901760, %v8684_v14  ;;  %v1292_v4 = vand.u32 4294901760, %v8686_v15 }
  0x6c   : > { %7638 = vmatpush1.bf16.msra.mxu1 %v8751_v61  ;;  %652 = vmatprep.subr.mxu0 %v8749_v60  ;;  %v8768_v5 = vsub.f32 %v564_v53, %v8758_v0  ;;  %v8770_v6 = vand.u32 4294901760, %v570_v1  ;;  %v1304_v7 = vand.u32 4294901760, %v8693_v20  ;;  %v8774_v8 = vand.u32 4294901760, %v8678_v11 }
  0x6d   : > { %1221 = vmatprep.subr.mxu1 %v8756_v63  ;;  %v724_v9 = vsub.f32 %v8682_v13, %v723_v2  ;;  %v736_v10 = vsub.f32 %v8684_v14, %v735_v3  ;;  %v1293_v16 = vsub.f32 %v8686_v15, %v1292_v4  ;;  %v729_v17 = vand.u32 4294901760, %v8697_v22 }
  0x6e   : > { %10631 = vst [vmem:[#allocation3_spill] sm:$0xff] %v8774_v8  ;;  %v8788_v18 = vsub.f32 %v570_v1, %v8770_v6  ;;  %v1305_v23 = vsub.f32 %v8693_v20, %v1304_v7  ;;  %v713_v25 = vsub.f32 %v8678_v11, %v8774_v8  ;;  %v741_v26 = vand.u32 4294901760, %v8701_v24 }
  0x6f   : > { %654 = vmatpush1.msra.mxu0 %v8758_v0  ;;  %v725_v27 = vand.u32 4294901760, %v724_v9  ;;  %v737_v28 = vand.u32 4294901760, %v736_v10  ;;  %v1294_v29 = vand.u32 4294901760, %v1293_v16  ;;  %v730_v30 = vsub.f32 %v8697_v22, %v729_v17 }
  0x70   : > { %1223 = vmatpush1.msra.mxu1 %v8770_v6  ;;  %v1306_v31 = vand.u32 4294901760, %v1305_v23  ;;  %v8801_v32 = vand.u32 4294901760, %v713_v25  ;;  %v742_v33 = vsub.f32 %v8701_v24, %v741_v26  ;;  %v1298_v34 = vand.u32 4294901760, %v8710_v36 }
  0x71   : > { %v7591_v39 = vpack.c.bf16 %v737_v28, %v725_v27  ;;  %v731_v40 = vand.u32 4294901760, %v730_v30  ;;  %v1310_v41 = vand.u32 4294901760, %v8712_v37  ;;  %v10529_v47 = vand.u32 4294901760, %v8714_v38 }
  0x72   : > { %v7639_v49 = vpack.c.bf16 %v1306_v31, %v1294_v29  ;;  %715 = vmatmul.mubr.f32.vlgmr.msra.gmra.mrb[0].mxu0 %v8801_v32  ;;  %v743_v50 = vand.u32 4294901760, %v742_v33  ;;  %1284 = vmatmul.mubr.f32.vlgmr.msra.gmra.mrb[0].mxu1 %v8801_v32  ;;  %v1299_v53 = vsub.f32 %v8710_v36, %v1298_v34  ;;  %v10527_v54 = vand.u32 4294901760, %v8721_v43 }
  0x73   : > { %7592 = vmatprep.subr.bf16.mxu0 %v7591_v39  ;;  %v1311_v1 = vsub.f32 %v8712_v37, %v1310_v41  ;;  %v748_v9 = vsub.f32 %v8714_v38, %v10529_v47  ;;  %v10528_v10 = vand.u32 4294901760, %v8725_v45  ;;  %v1328_v16 = vand.u32 4294901760, %v8728_v46  ;;  %835 = vmatprep.mubr.f32.mxu0 %v10548_v57 }
  0x74   : > { %7640 = vmatprep.subr.bf16.mxu1 %v7639_v49  ;;  %v7593_v23 = vpack.c.bf16 %v743_v50, %v731_v40  ;;  %v1300_v25 = vand.u32 4294901760, %v1299_v53  ;;  %v760_v27 = vsub.f32 %v8721_v43, %v10527_v54  ;;  %v10530_v28 = vand.u32 4294901760, %v8730_v48  ;;  %1404 = vmatprep.mubr.f32.mxu1 %v10548_v57 }
  0x75   : > { %v1312_v29 = vand.u32 4294901760, %v1311_v1  ;;  %v749_v30 = vand.u32 4294901760, %v748_v9  ;;  %v1317_v31 = vsub.f32 %v8725_v45, %v10528_v10  ;;  %v1329_v33 = vsub.f32 %v8728_v46, %v1328_v16 }
  0x76   : > { %7594 = vmatpush1.bf16.msra.mxu0 %v7593_v23  ;;  %v761_v39 = vand.u32 4294901760, %v760_v27  ;;  %v754_v40 = vsub.f32 %v8730_v48, %v10530_v28  ;;  %v765_v49 = vand.u32 4294901760, %v8744_v56  ;;  %v1322_v50 = vand.u32 4294901760, %v8746_v58 }
  0x77   : > { %v7641_v53 = vpack.c.bf16 %v1312_v29, %v1300_v25  ;;  %v1318_v1 = vand.u32 4294901760, %v1317_v31  ;;  %v1330_v9 = vand.u32 4294901760, %v1329_v33  ;;  %v10531_v54 = vand.u32 4294901760, %v8753_v62 }
  0x78   : > { %v7595_v10 = vpack.c.bf16 %v761_v39, %v749_v30  ;;  %v755_v47 = vand.u32 4294901760, %v754_v40  ;;  %v766_v23 = vsub.f32 %v8744_v56, %v765_v49  ;;  %v1323_v27 = vsub.f32 %v8746_v58, %v1322_v50 }
  0x79   : > { %7642 = vmatpush1.bf16.msra.mxu1 %v7641_v53  ;;  %v7643_v28 = vpack.c.bf16 %v1330_v9, %v1318_v1  ;;  %v1335_v25 = vsub.f32 %v8753_v62, %v10531_v54  ;;  %v8852_v29 = vsub.f32 %v8735_v51, %v8749_v60  ;;  %v8856_v30 = vsub.f32 %v8738_v52, %v8756_v63 }
  0x7a   : > { %7596 = vmatprep.subr.bf16.mxu0 %v7595_v10  ;;  %v767_v31 = vand.u32 4294901760, %v766_v23  ;;  %v1324_v33 = vand.u32 4294901760, %v1323_v27  ;;  %v10532_v39 = vand.u32 4294901760, %v8768_v5  ;;  %v1346_v40 = vand.u32 4294901760, %v8788_v18 }
  0x7b   : > { %7644 = vmatprep.subr.bf16.mxu1 %v7643_v28  ;;  %v1336_v53 = vand.u32 4294901760, %v1335_v25  ;;  %v771_v1 = vand.u32 4294901760, %v8852_v29  ;;  %v1340_v9 = vand.u32 4294901760, %v8856_v30 }
  0x7c   : > { %v7597_v54 = vpack.c.bf16 %v767_v31, %v755_v47  ;;  %v778_v51 = vsub.f32 %v8768_v5, %v10532_v39  ;;  %v1347_v52 = vsub.f32 %v8788_v18, %v1346_v40  ;;  %v7599_v39 = vpack.c.bf16 %v8684_v14, %v8682_v13 }
  0x7d   : > { %v7645_v10 = vpack.c.bf16 %v1336_v53, %v1324_v33  ;;  %v772_v23 = vsub.f32 %v8852_v29, %v771_v1  ;;  %v1341_v28 = vsub.f32 %v8856_v30, %v1340_v9  ;;  %v7647_v33 = vpack.c.bf16 %v8693_v20, %v8686_v15  ;;  %v437_v20 = vld [vmem:[%s8666_s4 + $0x28] sm:$0xff] }
  0x7e   : > { %7598 = vmatpush1.bf16.msra.mxu0 %v7597_v54  ;;  %v779_v27 = vand.u32 4294901760, %v778_v51  ;;  %v1348_v31 = vand.u32 4294901760, %v1347_v52  ;;  %v7601_v53 = vpack.c.bf16 %v8701_v24, %v8697_v22  ;;  %v7649_v54 = vpack.c.bf16 %v8712_v37, %v8710_v36  ;;  %v439_v36 = vld [vmem:[%s8666_s4 + $0x38] sm:$0xff] }
  0x7f   : > { %7646 = vmatpush1.bf16.msra.mxu1 %v7645_v10  ;;  %v773_v47 = vand.u32 4294901760, %v772_v23  ;;  %v1342_v25 = vand.u32 4294901760, %v1341_v28  ;;  %v7603_v51 = vpack.c.bf16 %v8721_v43, %v8714_v38  ;;  %v7651_v52 = vpack.c.bf16 %v8728_v46, %v8725_v45  ;;  %v463_v37 = vld [vmem:[%s8666_s4 + $0xf8] sm:$0xff]  ;;  %v436_v46 = vld [vmem:[%s8666_s4 + $0x20] sm:$0xff] }
  0x80   : > { %v7605_v10 = vpack.c.bf16 %v8744_v56, %v8730_v48  ;;  %v7653_v23 = vpack.c.bf16 %v8753_v62, %v8746_v58  ;;  %v7663_v28 = vpack.c.bf16 %v1304_v7, %v1292_v4  ;;  %v7665_v13 = vpack.c.bf16 %v1310_v41, %v1298_v34  ;;  %v460_v7 = vld [vmem:[%s8666_s4 + $0xe0] sm:$0xff]  ;;  %v438_v34 = vld [vmem:[%s8666_s4 + $0x30] sm:$0xff]  ;;  %v509_v58 = vld [vmem:[%s8666_s4 + $0x268] sm:$0xff] }
  0x81   : > { %774 = vmatprep.subr.mxu0 %v773_v47  ;;  %1343 = vmatprep.subr.mxu1 %v1342_v25  ;;  %v10632_v14 = vand.u32 4294901760, %v8714_v38  ;;  %v10634_v22 = vand.u32 4294901760, %v8725_v45  ;;  %v10635_v38 = vand.u32 4294901760, %v8730_v48  ;;  %v1773_v4 = vand.u32 4294901760, %v437_v20  ;;  %v462_v41 = vld [vmem:[%s8666_s4 + $0xf0] sm:$0xff]  ;;  %v485_v47 = vld [vmem:[%s8666_s4 + $0x1a8] sm:$0xff] }
  0x82   : > { %780 = vmatpush1.msra.mxu0 %v779_v27  ;;  %v7617_v27 = vpack.c.bf16 %v741_v26, %v729_v17  ;;  %v10636_v17 = vand.u32 4294901760, %v8753_v62  ;;  %v2342_v48 = vand.u32 4294901760, %v439_v36  ;;  %v2346_v56 = vand.u32 4294901760, %v463_v37  ;;  %v487_v25 = vld [vmem:[%s8666_s4 + $0x1b8] sm:$0xff] }
  0x83   : > { %1349 = vmatpush1.msra.mxu1 %v1348_v31  ;;  %7600 = vmatprep.subr.bf16.mxu0 %v7599_v39  ;;  %v7615_v39 = vpack.c.bf16 %v735_v3, %v723_v2  ;;  %v10633_v2 = vand.u32 4294901760, %v8721_v43  ;;  %v461_v3 = vld [vmem:[%s8666_s4 + $0xe8] sm:$0xff]  ;;  %v7667_v24 = vpack.c.bf16 %v1328_v16, %v10634_v22  ;;  %v7621_v43 = vpack.c.bf16 %v765_v49, %v10635_v38  ;;  %v511_v31 = vld [vmem:[%s8666_s4 + $0x278] sm:$0xff]  ;;  %v532_v38 = vld [vmem:[%s8666_s4 + $0x320] sm:$0xf] }
  0x84   : > { %7648 = vmatprep.subr.bf16.mxu1 %v7647_v33  ;;  %837 = vmatmul.mubr.f32.vlgmr.msra.gmra.mrb[0].mxu0 %v8664_v59  ;;  %v1777_v45 = vand.u32 4294901760, %v461_v3  ;;  %v7669_v26 = vpack.c.bf16 %v10636_v17, %v1322_v50  ;;  %v1775_v16 = vand.u32 4294901760, %v436_v46  ;;  %v1779_v49 = vand.u32 4294901760, %v460_v7 }
  0x85   : > { %7602 = vmatpush1.bf16.msra.mxu0 %v7601_v53  ;;  %1406 = vmatmul.mubr.f32.vlgmr.msra.gmra.mrb[0].mxu1 %v8664_v59  ;;  %v7619_v15 = vpack.c.bf16 %v10633_v2, %v10632_v14  ;;  %v8962_v50 = vsub.f32 %v437_v20, %v1773_v4  ;;  %v8970_v53 = vsub.f32 %v439_v36, %v2342_v48  ;;  %v2350_v2 = vand.u32 4294901760, %v487_v25 }
  0x86   : > { %7650 = vmatpush1.bf16.msra.mxu1 %v7649_v54  ;;  %7604 = vmatprep.subr.bf16.mxu0 %v7603_v51  ;;  %v8960_v62 = vpack.c.bf16 %v1777_v45, %v1773_v4  ;;  %v8968_v33 = vsub.f32 %v461_v3, %v1777_v45  ;;  %v2344_v54 = vand.u32 4294901760, %v438_v34  ;;  %v2348_v51 = vand.u32 4294901760, %v462_v41 }
  0x87   : > { %7652 = vmatprep.subr.bf16.mxu1 %v7651_v52  ;;  %927 = vmatprep.mubr.f32.mxu0 %v10548_v57  ;;  %v484_v52 = vld [vmem:[%s8666_s4 + $0x1a0] sm:$0xff]  ;;  %v8984_v14 = vsub.f32 %v436_v46, %v1775_v16  ;;  %v10637_v20 = vand.u32 4294901760, %v8768_v5  ;;  %v9014_v46 = vsub.f32 %v487_v25, %v2350_v2 }
  0x88   : > { %1496 = vmatprep.mubr.f32.mxu1 %v10548_v57  ;;  %v1783_v3 = vand.u32 4294901760, %v484_v52  ;;  %v8997_v36 = vsub.f32 %v462_v41, %v2348_v51 }
  0x89   : > { %7606 = vmatpush1.bf16.msra.mxu0 %v7605_v10  ;;  %v508_v10 = vld [vmem:[%s8666_s4 + $0x260] sm:$0xff] }
  0x8a   : > { %7654 = vmatpush1.bf16.msra.mxu1 %v7653_v23  ;;  %869 = vmatprep.subr.mxu0 %v8852_v29  ;;  %v8976_v23 = vpack.c.bf16 %v2346_v56, %v2342_v48  ;;  %v510_v29 = vld [vmem:[%s8666_s4 + $0x270] sm:$0xff]  ;;  %v1787_v22 = vand.u32 4294901760, %v508_v10  ;;  %v576_v48 = vsel %vm562_vm1, %v532_v38, 0 }
  0x8b   : > { %1438 = vmatprep.subr.mxu1 %v8856_v30  ;;  %v8988_v30 = vsub.f32 %v460_v7, %v1779_v49  ;;  %v535_v7 = vld [vmem:[%s8666_s4 + $0x338] sm:$0xf] }
  0x8c   : > { %v9021_v17 = vpack.c.bf16 %v1787_v22, %v1783_v3 }
  0x8d   : > { %872 = vmatpush1.msra.mxu0 %v8768_v5  ;;  %v2356_v5 = vand.u32 4294901760, %v510_v29 }
  0x8e   : > { %1441 = vmatpush1.msra.mxu1 %v8788_v18  ;;  %7608 = vmatprep.subr.bf16.mxu0 %v8680_v12 }
  0x8f   : > { %7656 = vmatprep.subr.bf16.mxu1 %v8691_v19  ;;  %930 = vmatmul.mubr.f32.vlgmr.msra.gmra.mrb[0].mxu0 %v8678_v11 }
  0x90   : > { %7610 = vmatpush1.bf16.msra.mxu0 %v8695_v21  ;;  %1499 = vmatmul.mubr.f32.vlgmr.msra.gmra.mrb[0].mxu1 %v8678_v11 }
  0x91   : > { %7658 = vmatpush1.bf16.msra.mxu1 %v8708_v35  ;;  %7612 = vmatprep.subr.bf16.mxu0 %v8719_v42 }
  0x92   : > { %7660 = vmatprep.subr.bf16.mxu1 %v8723_v44  ;;  %1010 = vmatprep.mubr.f32.mxu0 %v10548_v57 }
  0x93   : > { %1579 = vmatprep.mubr.f32.mxu1 %v10548_v57 }
  0x94   : > { %7614 = vmatpush1.bf16.msra.mxu0 %v8742_v55 }
  0x95   : > { %7662 = vmatpush1.bf16.msra.mxu1 %v8751_v61  ;;  %953 = vmatprep.subr.mxu0 %v8749_v60 }
  0x96   : > { %1522 = vmatprep.subr.mxu1 %v8756_v63 }
  0x98   : > { %955 = vmatpush1.msra.mxu0 %v8758_v0 }
  0x99   : > { %1524 = vmatpush1.msra.mxu1 %v8770_v6  ;;  %7616 = vmatprep.subr.bf16.mxu0 %v7615_v39  ;;  %v8978_v39 = vsub.f32 %v463_v37, %v2346_v56  ;;  %v10546_v56 = vand.u32 4294901760, %v8968_v33 }
  0x9a   : > { %7664 = vmatprep.subr.bf16.mxu1 %v7663_v28  ;;  %1014 = vmatmul.mubr.f32.vlgmr.msra.gmra.mrb[0].mxu0 %v8774_v8  ;;  %v1781_v28 = vand.u32 4294901760, %v485_v47 }
  0x9b   : > { %7618 = vmatpush1.bf16.msra.mxu0 %v7617_v27  ;;  %1583 = vmatmul.mubr.f32.vlgmr.msra.gmra.mrb[0].mxu1 %v8774_v8  ;;  %v1785_v27 = vand.u32 4294901760, %v509_v58 }
  0x9c   : > { %7666 = vmatpush1.bf16.msra.mxu1 %v7665_v13  ;;  %7620 = vmatprep.subr.bf16.mxu0 %v7619_v15  ;;  %v486_v13 = vld [vmem:[%s8666_s4 + $0x1b0] sm:$0xff]  ;;  %v2354_v15 = vand.u32 4294901760, %v511_v31  ;;  %v9004_v4 = vsub.f32 %v485_v47, %v1781_v28  ;;  %v10540_v47 = vand.u32 4294901760, %v8970_v53 }
  0x9d   : > { %7668 = vmatprep.subr.bf16.mxu1 %v7667_v24  ;;  %1114 = vmatprep.mubr.f32.mxu0 %v10548_v57  ;;  %v8995_v24 = vpack.c.bf16 %v2348_v51, %v2344_v54  ;;  %v2352_v37 = vand.u32 4294901760, %v486_v13  ;;  %v9006_v18 = vsub.f32 %v509_v58, %v1785_v27  ;;  %v9048_v58 = vand.u32 4294901760, %v576_v48 }
  0x9e   : > { %1683 = vmatprep.mubr.f32.mxu1 %v10548_v57  ;;  %v9012_v45 = vpack.c.bf16 %v2354_v15, %v2350_v2  ;;  %v1874_v51 = vsub.f32 %v8968_v33, %v10546_v56 }
  0x9f   : > { %7622 = vmatpush1.bf16.msra.mxu0 %v7621_v43  ;;  %v9002_v43 = vpack.c.bf16 %v1785_v27, %v1781_v28  ;;  %v9032_v41 = vpack.c.bf16 %v2356_v5, %v2352_v37 }
  0xa0   : > { %7670 = vmatpush1.bf16.msra.mxu1 %v7669_v26  ;;  %1055 = vmatprep.subr.mxu0 %v771_v1  ;;  %v8982_v1 = vpack.c.bf16 %v1779_v49, %v1775_v16  ;;  %v9023_v26 = vsub.f32 %v484_v52, %v1783_v3  ;;  %v9038_v16 = vsub.f32 %v510_v29, %v2356_v5  ;;  %v585_v49 = vsel %vm562_vm1, %v535_v7, 0 }
  0xa1   : > { %1624 = vmatprep.subr.mxu1 %v1340_v9  ;;  %v8990_v9 = vsub.f32 %v438_v34, %v2344_v54  ;;  %v9030_v34 = vsub.f32 %v508_v10, %v1787_v22  ;;  %v10538_v54 = vand.u32 4294901760, %v8984_v14  ;;  %v10537_v52 = vand.u32 4294901760, %v8988_v30 }
  0xa2   : > { %v10533_v10 = vand.u32 4294901760, %v8997_v36  ;;  %v9064_v27 = vand.u32 4294901760, %v585_v49  ;;  %v10541_v3 = vand.u32 4294901760, %v9014_v46  ;;  %v10544_v7 = vand.u32 4294901760, %v9023_v26 }
  0xa3   : > { %1059 = vmatpush1.msra.mxu0 %v10637_v20  ;;  %v1868_v20 = vsub.f32 %v8984_v14, %v10538_v54 }
  0xa4   : > { %1628 = vmatpush1.msra.mxu1 %v1346_v40  ;;  %7624 = vmatprep.subr.bf16.mxu0 %v8680_v12  ;;  %v533_v12 = vld [vmem:[%s8666_s4 + $0x328] sm:$0xf]  ;;  %v10547_v40 = vand.u32 4294901760, %v8962_v50  ;;  %v2449_v38 = vsub.f32 %v8997_v36, %v10533_v10 }
  0xa5   : > { %7672 = vmatprep.subr.bf16.mxu1 %v8691_v19  ;;  %1116 = vmatmul.mubr.f32.vlgmr.msra.gmra.mrb[0].mxu0 %v8664_v59  ;;  %v9016_v19 = vsub.f32 %v511_v31, %v2354_v15  ;;  %v10539_v31 = vand.u32 4294901760, %v8978_v39  ;;  %v2431_v15 = vsub.f32 %v8970_v53, %v10540_v47 }
  0xa6   : > { %7626 = vmatpush1.bf16.msra.mxu0 %v8695_v21  ;;  %1685 = vmatmul.mubr.f32.vlgmr.msra.gmra.mrb[0].mxu1 %v8664_v59  ;;  %v534_v21 = vld [vmem:[%s8666_s4 + $0x330] sm:$0xf] }
  0xa7   : > { %7674 = vmatpush1.bf16.msra.mxu1 %v8708_v35  ;;  %7628 = vmatprep.subr.bf16.mxu0 %v8719_v42  ;;  %v9034_v35 = vsub.f32 %v486_v13, %v2352_v37  ;;  %v579_v42 = vsel %vm562_vm1, %v533_v12, 0  ;;  %v582_v25 = vsel %vm562_vm1, %v534_v21, 0  ;;  %v9069_v13 = vsub.f32 %v576_v48, %v9048_v58 }
  0xa8   : > { %7676 = vmatprep.subr.bf16.mxu1 %v8723_v44  ;;  %1196 = vmatprep.mubr.f32.mxu0 %v10548_v57  ;;  %v9044_v44 = vsub.f32 %v8962_v50, %v10547_v40  ;;  %v9062_v28 = vand.u32 4294901760, %v579_v42  ;;  %v9071_v29 = vand.u32 4294901760, %v582_v25  ;;  %v10542_v22 = vand.u32 4294901760, %v9016_v19 }
  0xa9   : > { %1765 = vmatprep.mubr.f32.mxu1 %v10548_v57  ;;  %v1875_v37 = vand.u32 4294901760, %v1874_v51  ;;  %v10543_v48 = vand.u32 4294901760, %v9030_v34  ;;  %v2432_v21 = vand.u32 4294901760, %v2431_v15  ;;  %v10550_v51 = vand.u32 4294901760, %v9038_v16 }
  0xaa   : > { %7630 = vmatpush1.bf16.msra.mxu0 %v8742_v55  ;;  %v10536_v55 = vand.u32 4294901760, %v8990_v9  ;;  %v1863_v2 = vand.u32 4294901760, %v9044_v44  ;;  %v10545_v44 = vand.u32 4294901760, %v9034_v35  ;;  %v9112_v10 = vsub.f32 %v579_v42, %v9062_v28 }
  0xab   : > { %7678 = vmatpush1.bf16.msra.mxu1 %v8751_v61  ;;  %1139 = vmatprep.subr.mxu0 %v8749_v60  ;;  %v10535_v61 = vand.u32 4294901760, %v9004_v4  ;;  %v10534_v60 = vand.u32 4294901760, %v9006_v18  ;;  %v2467_v15 = vsub.f32 %v9016_v19, %v10542_v22  ;;  %v1869_v42 = vand.u32 4294901760, %v1868_v20 }
  0xac   : > { %1708 = vmatprep.subr.mxu1 %v8756_v63  ;;  %v2443_v63 = vsub.f32 %v8978_v39, %v10539_v31  ;;  %v2437_v5 = vsub.f32 %v8990_v9, %v10536_v55  ;;  %v9123_v55 = vsub.f32 %v585_v49, %v9064_v27  ;;  %v2450_v31 = vand.u32 4294901760, %v2449_v38 }
  0xad   : > { %v1898_v12 = vsub.f32 %v9006_v18, %v10534_v60  ;;  %v1904_v49 = vsub.f32 %v9030_v34, %v10543_v48  ;;  %v9136_v22 = vsub.f32 %v582_v25, %v9071_v29  ;;  %v2461_v20 = vsub.f32 %v9034_v35, %v10545_v44 }
  0xae   : > { %1141 = vmatpush1.msra.mxu0 %v8758_v0  ;;  %v1880_v0 = vsub.f32 %v8988_v30, %v10537_v52  ;;  %v2444_v60 = vand.u32 4294901760, %v2443_v63  ;;  %v2438_v54 = vand.u32 4294901760, %v2437_v5  ;;  %v7687_v38 = vpack.c.bf16 %v1875_v37, %v1863_v2 }
  0xaf   : > { %1710 = vmatpush1.msra.mxu1 %v8770_v6  ;;  %1198 = vmatmul.mubr.f32.vlgmr.msra.gmra.mrb[0].mxu0 %v8664_v59  ;;  %v1886_v6 = vsub.f32 %v9004_v4, %v10535_v61  ;;  %v2455_v61 = vsub.f32 %v9014_v46, %v10541_v3  ;;  %v1899_v47 = vand.u32 4294901760, %v1898_v12  ;;  %v1892_v3 = vsub.f32 %v9023_v26, %v10544_v7 }
  0xb0   : > { %1767 = vmatmul.mubr.f32.vlgmr.msra.gmra.mrb[0].mxu1 %v8664_v59  ;;  %7680 = vmatprep.subr.bf16.mxu0 %v8960_v62  ;;  %v1881_v52 = vand.u32 4294901760, %v1880_v0  ;;  %v2473_v0 = vsub.f32 %v9038_v16, %v10550_v51  ;;  %v2468_v12 = vand.u32 4294901760, %v2467_v15  ;;  %v2478_v25 = vand.u32 4294901760, %v9123_v55 }
  0xb1   : > { %7728 = vmatprep.subr.bf16.mxu1 %v8976_v23  ;;  %7682 = vmatpush1.bf16.msra.mxu0 %v8982_v1  ;;  %v1887_v63 = vand.u32 4294901760, %v1886_v6  ;;  %v2456_v6 = vand.u32 4294901760, %v2455_v61  ;;  %v7735_v48 = vpack.c.bf16 %v2444_v60, %v2432_v21  ;;  %v7737_v44 = vpack.c.bf16 %v2450_v31, %v2438_v54 }
  0xb2   : > { %7730 = vmatpush1.bf16.msra.mxu1 %v8995_v24  ;;  %7684 = vmatprep.subr.bf16.mxu0 %v9002_v43  ;;  %v7689_v7 = vpack.c.bf16 %v1881_v52, %v1869_v42  ;;  %v1893_v40 = vand.u32 4294901760, %v1892_v3  ;;  %v1915_v51 = vand.u32 4294901760, %v9069_v13  ;;  %v2462_v5 = vand.u32 4294901760, %v2461_v20 }
  0xb3   : > { %7732 = vmatprep.subr.bf16.mxu1 %v9012_v45  ;;  %1847 = vmatprep.mubr.f32.mxu0 %v10548_v57  ;;  %v7691_v56 = vpack.c.bf16 %v1899_v47, %v1887_v63  ;;  %v2474_v8 = vand.u32 4294901760, %v2473_v0  ;;  %v10638_v2 = vand.u32 4294901760, %v9112_v10  ;;  %v2484_v37 = vand.u32 4294901760, %v9136_v22 }
  0xb4   : > { %2416 = vmatprep.mubr.f32.mxu1 %v10548_v57  ;;  %v1905_v57 = vand.u32 4294901760, %v1904_v49  ;;  %v7739_v52 = vpack.c.bf16 %v2468_v12, %v2456_v6  ;;  %v2479_v47 = vsub.f32 %v9123_v55, %v2478_v25  ;;  %v1916_v54 = vsub.f32 %v9069_v13, %v1915_v51 }
  0xb5   : > { %7686 = vmatpush1.bf16.msra.mxu0 %v9021_v17  ;;  %v1910_v61 = vsub.f32 %v9112_v10, %v10638_v2  ;;  %v7741_v60 = vpack.c.bf16 %v2474_v8, %v2462_v5  ;;  %v2485_v21 = vsub.f32 %v9136_v22, %v2484_v37  ;;  %v10639_v15 = vmov 0.0  }
  0xb6   : > { %7734 = vmatpush1.bf16.msra.mxu1 %v9032_v41  ;;  %1790 = vmatprep.subr.mxu0 %v9062_v28  ;;  %v7693_v31 = vpack.c.bf16 %v1905_v57, %v1893_v40  ;;  %v1917_v57 = vand.u32 4294901760, %v1916_v54  ;;  %v552_v40 = vld [vmem:[%s10525_s2] sm:$0xff]  ;;  %v7697_v42 = vpack.c.bf16 %v8988_v30, %v8984_v14  ;;  %v7745_v63 = vpack.c.bf16 %v8997_v36, %v8990_v9 }
  0xb7   : > { %2359 = vmatprep.subr.mxu1 %v9064_v27  ;;  %v1911_v3 = vand.u32 4294901760, %v1910_v61  ;;  %v2486_v8 = vand.u32 4294901760, %v2485_v21  ;;  %v7699_v49 = vpack.c.bf16 %v9006_v18, %v9004_v4  ;;  %v7747_v20 = vpack.c.bf16 %v9016_v19, %v9014_v46 }
  0xb8   : > { %v7701_v0 = vpack.c.bf16 %v9030_v34, %v9023_v26  ;;  %v7749_v5 = vpack.c.bf16 %v9038_v16, %v9034_v35  ;;  %v10641_v6 = vand.u32 4294901760, %v8968_v33  ;;  %v10642_v2 = vand.u32 4294901760, %v8970_v53 }
  0xb9   : > { %1792 = vmatpush1.msra.mxu0 %v9048_v58  ;;  %v10643_v61 = vand.u32 4294901760, %v8978_v39  ;;  %v10649_v21 = vand.u32 4294901760, %v9006_v18  ;;  %v10653_v18 = vand.u32 4294901760, %v9023_v26 }
  0xba   : > { %2361 = vmatpush1.msra.mxu1 %v9071_v29  ;;  %7688 = vmatprep.subr.bf16.mxu0 %v7687_v38  ;;  %v10640_v38 = vand.u32 4294901760, %v8962_v50 }
  0xbb   : > { %7736 = vmatprep.subr.bf16.mxu1 %v7735_v48  ;;  %1853 = vmatmul.mubr.f32.vlgmr.msra.gmra.mrb[2].mxu0 %v8801_v32  ;;  %v2480_v48 = vand.u32 4294901760, %v2479_v47  ;;  %v10644_v47 = vand.u32 4294901760, %v8984_v14  ;;  %v10650_v14 = vand.u32 4294901760, %v9014_v46 }
  0xbc   : > { %7690 = vmatpush1.bf16.msra.mxu0 %v7689_v7  ;;  %2422 = vmatmul.mubr.f32.vlgmr.msra.gmra.mrb[2].mxu1 %v8801_v32  ;;  %v7743_v7 = vpack.c.bf16 %v8978_v39, %v8970_v53  ;;  %v7711_v12 = vpack.c.bf16 %v10641_v6, %v10640_v38  ;;  %v441_v39 = vld [vmem:[%s8666_s4 + $0x48] sm:$0xff] }
  0xbd   : > { %7738 = vmatpush1.bf16.msra.mxu1 %v7737_v44  ;;  %7692 = vmatprep.subr.bf16.mxu0 %v7691_v56  ;;  %v7695_v56 = vpack.c.bf16 %v8968_v33, %v8962_v50  ;;  %v8357_v44 = vmov 0   ;;  %v10647_v50 = vand.u32 4294901760, %v8997_v36  ;;  %v467_v36 = vld [vmem:[%s8666_s4 + $0x118] sm:$0xff]  ;;  %v489_v38 = vld [vmem:[%s8666_s4 + $0x1c8] sm:$0xff] }
  0xbe   : > { %7740 = vmatprep.subr.bf16.mxu1 %v7739_v52  ;;  %1973 = vmatprep.mubr.f32.mxu0 %v10639_v15  ;;  %v7759_v52 = vpack.c.bf16 %v10643_v61, %v10642_v2  ;;  %v3484_v26 = vand.u32 4294901760, %v467_v36  ;;  %v491_v2 = vld [vmem:[%s8666_s4 + $0x1d8] sm:$0xff] }
  0xbf   : > { %2542 = vmatprep.mubr.f32.mxu1 %v10639_v15  ;;  %8331 = vset.pattern.permute.xlu0 %v8357_v44  ;;  %v10655_v44 = vand.u32 4294901760, %v9034_v35  ;;  %v513_v35 = vld [vmem:[%s8666_s4 + $0x288] sm:$0xff]  ;;  %v515_v61 = vld [vmem:[%s8666_s4 + $0x298] sm:$0xff] }
  0xc0   : > { %7694 = vmatpush1.bf16.msra.mxu0 %v7693_v31  ;;  %555 = vperm.xlu0 %8331, %v552_v40   ;;  %v10645_v31 = vand.u32 4294901760, %v8988_v30  ;;  %v10651_v30 = vand.u32 4294901760, %v9016_v19  ;;  %v10654_v40 = vand.u32 4294901760, %v9030_v34  ;;  %v440_v19 = vld [vmem:[%s8666_s4 + $0x40] sm:$0xff]  ;;  %v466_v34 = vld [vmem:[%s8666_s4 + $0x110] sm:$0xff] }
  0xc1   : > { %7742 = vmatpush1.bf16.msra.mxu1 %v7741_v60  ;;  %1912 = vmatprep.subr.mxu0 %v1911_v3  ;;  %v10646_v60 = vand.u32 4294901760, %v8990_v9  ;;  %v10648_v3 = vand.u32 4294901760, %v9004_v4  ;;  %v10652_v4 = vld [vmem:[#allocation3_spill] sm:$0xff] }
  0xc2   : > { %2481 = vmatprep.subr.mxu1 %v2480_v48  ;;  %v7713_v54 = vpack.c.bf16 %v10645_v31, %v10644_v47  ;;  %v465_v48 = vld [vmem:[%s8666_s4 + $0x108] sm:$0xff]  ;;  %v7763_v9 = vpack.c.bf16 %v10651_v30, %v10650_v14  ;;  %v490_v14 = vld [vmem:[%s8666_s4 + $0x1d0] sm:$0xff]  ;;  %v3488_v30 = vand.u32 4294901760, %v491_v2 }
  0xc3   : > { %v7761_v33 = vpack.c.bf16 %v10647_v50, %v10646_v60  ;;  %v7715_v53 = vpack.c.bf16 %v10649_v21, %v10648_v3  ;;  %v2915_v46 = vand.u32 4294901760, %v465_v48  ;;  %v488_v60 = vld [vmem:[%s8666_s4 + $0x1c0] sm:$0xff]  ;;  %v9276_v3 = vsub.f32 %v467_v36, %v3484_v26 }
  0xc4   : > { %1918 = vmatpush1.msra.mxu0 %v1917_v57  ;;  %v443_v57 = vld [vmem:[%s8666_s4 + $0x58] sm:$0xff]  ;;  %v512_v50 = vld [vmem:[%s8666_s4 + $0x280] sm:$0xff]  ;;  %v2919_v21 = vand.u32 4294901760, %v489_v38 }
  0xc5   : > { %2487 = vmatpush1.msra.mxu1 %v2486_v8  ;;  %7696 = vmatprep.subr.bf16.mxu0 %v7695_v56  ;;  %v7717_v8 = vpack.c.bf16 %v10654_v40, %v10653_v18  ;;  %v2911_v56 = vand.u32 4294901760, %v441_v39  ;;  %v9266_v31 = vsub.f32 %v465_v48, %v2915_v46  ;;  %v2925_v36 = vand.u32 4294901760, %v512_v50 }
  0xc6   : > { %7744 = vmatprep.subr.bf16.mxu1 %v7743_v7  ;;  %1975 = vmatmul.mubr.f32.vlgmr.msra.gmra.mrb[2].mxu0 %v8664_v59  ;;  %v464_v7 = vld [vmem:[%s8666_s4 + $0x100] sm:$0xff] }
  0xc7   : > { %7698 = vmatpush1.bf16.msra.mxu0 %v7697_v42  ;;  %2544 = vmatmul.mubr.f32.vlgmr.msra.gmra.mrb[2].mxu1 %v8664_v59  ;;  %v10656_v42 = vand.u32 4294901760, %v9038_v16  ;;  %v9258_v16 = vpack.c.bf16 %v2915_v46, %v2911_v56  ;;  %v9264_v47 = vsub.f32 %v441_v39, %v2911_v56  ;;  %v9302_v46 = vsub.f32 %v489_v38, %v2919_v21 }
  0xc8   : > { %7746 = vmatpush1.bf16.msra.mxu1 %v7745_v63  ;;  %7700 = vmatprep.subr.bf16.mxu0 %v7699_v49  ;;  %v3480_v49 = vand.u32 4294901760, %v443_v57 }
  0xc9   : > { %7748 = vmatprep.subr.bf16.mxu1 %v7747_v20  ;;  %2065 = vmatprep.mubr.f32.mxu0 %v10639_v15  ;;  %v7765_v63 = vpack.c.bf16 %v10656_v42, %v10655_v44  ;;  %v442_v20 = vld [vmem:[%s8666_s4 + $0x50] sm:$0xff]  ;;  %v539_v44 = vld [vmem:[%s8666_s4 + $0x358] sm:$0xf] }
  0xca   : > { %2634 = vmatprep.mubr.f32.mxu1 %v10639_v15  ;;  %v3482_v6 = vand.u32 4294901760, %v442_v20 }
  0xcb   : > { %7702 = vmatpush1.bf16.msra.mxu0 %v7701_v0  ;;  %v2913_v0 = vand.u32 4294901760, %v440_v19 }
  0xcc   : > { %7750 = vmatpush1.bf16.msra.mxu1 %v7749_v5  ;;  %2007 = vmatprep.subr.mxu0 %v9112_v10  ;;  %v2917_v5 = vand.u32 4294901760, %v464_v7  ;;  %v9293_v18 = vsub.f32 %v442_v20, %v3482_v6  ;;  %v9328_v20 = vsub.f32 %v512_v50, %v2925_v36 }
  0xcd   : > { %2576 = vmatprep.subr.mxu1 %v9123_v55  ;;  %v9282_v48 = vsub.f32 %v440_v19, %v2913_v0 }
  0xce   : > { %v9280_v39 = vpack.c.bf16 %v2917_v5, %v2913_v0  ;;  %v9286_v55 = vsub.f32 %v464_v7, %v2917_v5  ;;  %v9312_v7 = vsub.f32 %v491_v2, %v3488_v30  ;;  %v597_v5 = vsel %vm562_vm1, %v539_v44, 0 }
  0xcf   : > { %2010 = vmatpush1.msra.mxu0 %v9069_v13  ;;  %v10558_v2 = vand.u32 4294901760, %v9282_v48 }
  0xd0   : > { %2579 = vmatpush1.msra.mxu1 %v9136_v22  ;;  %7704 = vmatprep.subr.bf16.mxu0 %v8960_v62 }
  0xd1   : > { %7752 = vmatprep.subr.bf16.mxu1 %v8976_v23  ;;  %2068 = vmatmul.mubr.f32.vlgmr.msra.gmra.mrb[2].mxu0 %v8678_v11 }
  0xd2   : > { %7706 = vmatpush1.bf16.msra.mxu0 %v8982_v1  ;;  %2637 = vmatmul.mubr.f32.vlgmr.msra.gmra.mrb[2].mxu1 %v8678_v11 }
  0xd3   : > { %7754 = vmatpush1.bf16.msra.mxu1 %v8995_v24  ;;  %7708 = vmatprep.subr.bf16.mxu0 %v9002_v43 }
  0xd4   : > { %7756 = vmatprep.subr.bf16.mxu1 %v9012_v45  ;;  %2148 = vmatprep.mubr.f32.mxu0 %v10639_v15 }
  0xd5   : > { %2717 = vmatprep.mubr.f32.mxu1 %v10639_v15 }
  0xd6   : > { %7710 = vmatpush1.bf16.msra.mxu0 %v9021_v17 }
  0xd7   : > { %7758 = vmatpush1.bf16.msra.mxu1 %v9032_v41  ;;  %2091 = vmatprep.subr.mxu0 %v9062_v28 }
  0xd8   : > { %2660 = vmatprep.subr.mxu1 %v9064_v27 }
  0xda   : > { %2093 = vmatpush1.msra.mxu0 %v9048_v58 }
  0xdb   : > { %2662 = vmatpush1.msra.mxu1 %v9071_v29  ;;  %7712 = vmatprep.subr.bf16.mxu0 %v7711_v12  ;;  %v3486_v12 = vand.u32 4294901760, %v466_v34 }
  0xdc   : > { %7760 = vmatprep.subr.bf16.mxu1 %v7759_v52  ;;  %2152 = vmatmul.mubr.f32.vlgmr.msra.gmra.mrb[2].mxu0 %v10652_v4  ;;  %v10657_v52 = vand.u32 4294901760, %v9112_v10  ;;  %v514_v10 = vld [vmem:[%s8666_s4 + $0x290] sm:$0xff] }
  0xdd   : > { %7714 = vmatpush1.bf16.msra.mxu0 %v7713_v54  ;;  %2721 = vmatmul.mubr.f32.vlgmr.msra.gmra.mrb[2].mxu1 %v10652_v4  ;;  %v9268_v54 = vpack.c.bf16 %v3484_v26, %v3480_v49  ;;  %v9295_v40 = vsub.f32 %v466_v34, %v3486_v12  ;;  %v3494_v13 = vand.u32 4294901760, %v514_v10  ;;  %v10566_v26 = vand.u32 4294901760, %v9266_v31 }
  0xde   : > { %7762 = vmatpush1.bf16.msra.mxu1 %v7761_v33  ;;  %7716 = vmatprep.subr.bf16.mxu0 %v7715_v53  ;;  %v9274_v33 = vsub.f32 %v443_v57, %v3480_v49  ;;  %v2923_v53 = vand.u32 4294901760, %v513_v35  ;;  %v2921_v57 = vand.u32 4294901760, %v488_v60 }
  0xdf   : > { %7764 = vmatprep.subr.bf16.mxu1 %v7763_v9  ;;  %2252 = vmatprep.mubr.f32.mxu0 %v10639_v15  ;;  %v3492_v9 = vand.u32 4294901760, %v515_v61  ;;  %v9336_v0 = vsub.f32 %v514_v10, %v3494_v13 }
  0xe0   : > { %2821 = vmatprep.mubr.f32.mxu1 %v10639_v15  ;;  %v9300_v56 = vpack.c.bf16 %v2923_v53, %v2919_v21  ;;  %v9304_v22 = vsub.f32 %v513_v35, %v2923_v53  ;;  %v9319_v42 = vpack.c.bf16 %v2925_v36, %v2921_v57  ;;  %v10560_v38 = vand.u32 4294901760, %v9274_v33 }
  0xe1   : > { %7718 = vmatpush1.bf16.msra.mxu0 %v7717_v8  ;;  %v3490_v8 = vand.u32 4294901760, %v490_v14  ;;  %v9310_v19 = vpack.c.bf16 %v3492_v9, %v3488_v30  ;;  %v9362_v21 = vand.u32 4294901760, %v597_v5 }
  0xe2   : > { %7766 = vmatpush1.bf16.msra.mxu1 %v7765_v63  ;;  %2193 = vmatprep.subr.mxu0 %v10657_v52  ;;  %v9321_v63 = vsub.f32 %v488_v60, %v2921_v57  ;;  %v10557_v52 = vand.u32 4294901760, %v9286_v55  ;;  %v10553_v60 = vand.u32 4294901760, %v9295_v40  ;;  %v3569_v30 = vsub.f32 %v9274_v33, %v10560_v38 }
  0xe3   : > { %2762 = vmatprep.subr.mxu1 %v2478_v25  ;;  %v9288_v25 = vpack.c.bf16 %v3486_v12, %v3482_v6  ;;  %v9330_v34 = vpack.c.bf16 %v3494_v13, %v3490_v8  ;;  %v10559_v12 = vand.u32 4294901760, %v9276_v3  ;;  %v10561_v57 = vand.u32 4294901760, %v9312_v7 }
  0xe4   : > { %v10564_v44 = vand.u32 4294901760, %v9321_v63 }
  0xe5   : > { %2197 = vmatpush1.msra.mxu0 %v1915_v51  ;;  %v536_v51 = vld [vmem:[%s8666_s4 + $0x340] sm:$0xf]  ;;  %10658 = vst [vmem:[#allocation4_spill] sm:$0xff] %v9330_v34 }
  0xe6   : > { %2766 = vmatpush1.msra.mxu1 %v2484_v37  ;;  %7720 = vmatprep.subr.bf16.mxu0 %v8960_v62  ;;  %v537_v62 = vld [vmem:[%s8666_s4 + $0x348] sm:$0xf]  ;;  %v10567_v37 = vand.u32 4294901760, %v9264_v47  ;;  %v588_v49 = vsel %vm562_vm1, %v536_v51, 0  ;;  %v3587_v51 = vsub.f32 %v9295_v40, %v10553_v60 }
  0xe7   : > { %7768 = vmatprep.subr.bf16.mxu1 %v8976_v23  ;;  %2254 = vmatmul.mubr.f32.vlgmr.msra.gmra.mrb[2].mxu0 %v8664_v59  ;;  %v9314_v23 = vsub.f32 %v515_v61, %v3492_v9  ;;  %v9346_v35 = vand.u32 4294901760, %v588_v49  ;;  %v3012_v61 = vsub.f32 %v9266_v31, %v10566_v26  ;;  %v3006_v9 = vsub.f32 %v9282_v48, %v10558_v2 }
  0xe8   : > { %7722 = vmatpush1.bf16.msra.mxu0 %v8982_v1  ;;  %2823 = vmatmul.mubr.f32.vlgmr.msra.gmra.mrb[2].mxu1 %v8664_v59  ;;  %v538_v1 = vld [vmem:[%s8666_s4 + $0x350] sm:$0xf] }
  0xe9   : > { %7770 = vmatpush1.bf16.msra.mxu1 %v8995_v24  ;;  %7724 = vmatprep.subr.bf16.mxu0 %v9002_v43  ;;  %v9332_v24 = vsub.f32 %v490_v14, %v3490_v8  ;;  %v591_v43 = vsel %vm562_vm1, %v537_v62, 0  ;;  %v594_v6 = vsel %vm562_vm1, %v538_v1, 0  ;;  %v9367_v53 = vsub.f32 %v588_v49, %v9346_v35 }
  0xea   : > { %7772 = vmatprep.subr.bf16.mxu1 %v9012_v45  ;;  %2334 = vmatprep.mubr.f32.mxu0 %v10639_v15  ;;  %v9342_v45 = vsub.f32 %v9264_v47, %v10567_v37  ;;  %v9360_v50 = vand.u32 4294901760, %v591_v43  ;;  %v9369_v14 = vand.u32 4294901760, %v594_v6  ;;  %v10562_v36 = vand.u32 4294901760, %v9314_v23 }
  0xeb   : > { %2903 = vmatprep.mubr.f32.mxu1 %v10639_v15  ;;  %v3013_v8 = vand.u32 4294901760, %v3012_v61  ;;  %v10563_v49 = vand.u32 4294901760, %v9328_v20  ;;  %v3570_v1 = vand.u32 4294901760, %v3569_v30  ;;  %v10569_v61 = vand.u32 4294901760, %v9336_v0 }
  0xec   : > { %7726 = vmatpush1.bf16.msra.mxu0 %v9021_v17  ;;  %v10556_v17 = vand.u32 4294901760, %v9293_v18  ;;  %v3001_v10 = vand.u32 4294901760, %v9342_v45  ;;  %v10565_v45 = vand.u32 4294901760, %v9332_v24  ;;  %v9410_v60 = vsub.f32 %v591_v43, %v9360_v50 }
  0xed   : > { %7774 = vmatpush1.bf16.msra.mxu1 %v9032_v41  ;;  %2277 = vmatprep.subr.mxu0 %v9062_v28  ;;  %v10555_v41 = vand.u32 4294901760, %v9302_v46  ;;  %v10554_v28 = vand.u32 4294901760, %v9304_v22  ;;  %v3605_v30 = vsub.f32 %v9314_v23, %v10562_v36  ;;  %v3007_v43 = vand.u32 4294901760, %v3006_v9 }
  0xee   : > { %2846 = vmatprep.subr.mxu1 %v9064_v27  ;;  %v3581_v27 = vsub.f32 %v9276_v3, %v10559_v12  ;;  %v3575_v13 = vsub.f32 %v9293_v18, %v10556_v17  ;;  %v9421_v17 = vsub.f32 %v597_v5, %v9362_v21  ;;  %v3588_v12 = vand.u32 4294901760, %v3587_v51 }
  0xef   : > { %v3036_v62 = vsub.f32 %v9304_v22, %v10554_v28  ;;  %v3042_v5 = vsub.f32 %v9328_v20, %v10563_v49  ;;  %v9434_v36 = vsub.f32 %v594_v6, %v9369_v14  ;;  %v3599_v9 = vsub.f32 %v9332_v24, %v10565_v45 }
  0xf0   : > { %2279 = vmatpush1.msra.mxu0 %v9048_v58  ;;  %v3018_v58 = vsub.f32 %v9286_v55, %v10557_v52  ;;  %v3582_v28 = vand.u32 4294901760, %v3581_v27  ;;  %v3576_v2 = vand.u32 4294901760, %v3575_v13  ;;  %v7783_v51 = vpack.c.bf16 %v3013_v8, %v3001_v10 }
  0xf1   : > { %2848 = vmatpush1.msra.mxu1 %v9071_v29  ;;  %2336 = vmatmul.mubr.f32.vlgmr.msra.gmra.mrb[2].mxu0 %v8664_v59  ;;  %v3024_v29 = vsub.f32 %v9302_v46, %v10555_v41  ;;  %v3593_v41 = vsub.f32 %v9312_v7, %v10561_v57  ;;  %v3037_v38 = vand.u32 4294901760, %v3036_v62  ;;  %v3030_v57 = vsub.f32 %v9321_v63, %v10564_v44 }
  0xf2   : > { %2905 = vmatmul.mubr.f32.vlgmr.msra.gmra.mrb[2].mxu1 %v8664_v59  ;;  %7776 = vmatprep.subr.bf16.mxu0 %v9258_v16  ;;  %v3019_v52 = vand.u32 4294901760, %v3018_v58  ;;  %v3611_v58 = vsub.f32 %v9336_v0, %v10569_v61  ;;  %v3606_v62 = vand.u32 4294901760, %v3605_v30  ;;  %v3616_v6 = vand.u32 4294901760, %v9421_v17 }
  0xf3   : > { %7824 = vmatprep.subr.bf16.mxu1 %v9268_v54  ;;  %7778 = vmatpush1.bf16.msra.mxu0 %v9280_v39  ;;  %v3025_v27 = vand.u32 4294901760, %v3024_v29  ;;  %v3594_v29 = vand.u32 4294901760, %v3593_v41  ;;  %v7831_v49 = vpack.c.bf16 %v3582_v28, %v3570_v1  ;;  %v7833_v45 = vpack.c.bf16 %v3588_v12, %v3576_v2 }
  0xf4   : > { %7826 = vmatpush1.bf16.msra.mxu1 %v9288_v25  ;;  %7780 = vmatprep.subr.bf16.mxu0 %v9300_v56  ;;  %v7785_v44 = vpack.c.bf16 %v3019_v52, %v3007_v43  ;;  %v3031_v37 = vand.u32 4294901760, %v3030_v57  ;;  %v3043_v4 = vand.u32 4294901760, %v3042_v5  ;;  %v3053_v61 = vand.u32 4294901760, %v9367_v53 }
  0xf5   : > { %7828 = vmatprep.subr.bf16.mxu1 %v9310_v19  ;;  %2985 = vmatprep.mubr.f32.mxu0 %v10639_v15  ;;  %v7787_v26 = vpack.c.bf16 %v3037_v38, %v3025_v27  ;;  %v3600_v13 = vand.u32 4294901760, %v3599_v9  ;;  %v10659_v10 = vand.u32 4294901760, %v9410_v60  ;;  %v3622_v8 = vand.u32 4294901760, %v9434_v36  ;;  %v10660_v9 = vld [vmem:[#allocation4_spill] sm:$0xff] }
  0xf6   : > { %3554 = vmatprep.mubr.f32.mxu1 %v10639_v15  ;;  %v7835_v52 = vpack.c.bf16 %v3606_v62, %v3594_v29  ;;  %v3617_v38 = vsub.f32 %v9421_v17, %v3616_v6  ;;  %v7789_v12 = vpack.c.bf16 %v3043_v4, %v3031_v37  ;;  %v3054_v2 = vsub.f32 %v9367_v53, %v3053_v61 }
  0xf7   : > { %7782 = vmatpush1.bf16.msra.mxu0 %v9319_v42  ;;  %v3048_v41 = vsub.f32 %v9410_v60, %v10659_v10  ;;  %v3623_v1 = vsub.f32 %v9434_v36, %v3622_v8  ;;  %v7795_v30 = vpack.c.bf16 %v9304_v22, %v9302_v46  ;;  %v7843_v43 = vpack.c.bf16 %v9314_v23, %v9312_v7 }
  0xf8   : > { %7830 = vmatpush1.bf16.msra.mxu1 %v9330_v34  ;;  %2928 = vmatprep.subr.mxu0 %v9360_v50  ;;  %v3612_v34 = vand.u32 4294901760, %v3611_v58  ;;  %v3055_v4 = vand.u32 4294901760, %v3054_v2  ;;  %v7797_v27 = vpack.c.bf16 %v9328_v20, %v9321_v63  ;;  %v7845_v5 = vpack.c.bf16 %v9336_v0, %v9332_v24 }
  0xf9   : > { %3497 = vmatprep.subr.mxu1 %v9362_v21  ;;  %v3049_v57 = vand.u32 4294901760, %v3048_v41  ;;  %v3624_v37 = vand.u32 4294901760, %v3623_v1  ;;  %v10661_v58 = vand.u32 4294901760, %v9264_v47  ;;  %v10663_v29 = vand.u32 4294901760, %v9274_v33  ;;  %v471_v1 = vld [vmem:[%s8666_s4 + $0x138] sm:$0xff] }
  0xfa   : > { %v7837_v28 = vpack.c.bf16 %v3612_v34, %v3600_v13  ;;  %v7839_v34 = vpack.c.bf16 %v9276_v3, %v9274_v33  ;;  %v10662_v13 = vand.u32 4294901760, %v9266_v31  ;;  %v10664_v62 = vand.u32 4294901760, %v9276_v3  ;;  %v445_v3 = vld [vmem:[%s8666_s4 + $0x68] sm:$0xff] }
  0xfb   : > { %2930 = vmatpush1.msra.mxu0 %v9346_v35  ;;  %v10665_v41 = vand.u32 4294901760, %v9282_v48  ;;  %v10669_v2 = vand.u32 4294901760, %v9302_v46  ;;  %v447_v46 = vld [vmem:[%s8666_s4 + $0x78] sm:$0xff] }
  0xfc   : > { %3499 = vmatpush1.msra.mxu1 %v9369_v14  ;;  %7784 = vmatprep.subr.bf16.mxu0 %v7783_v51  ;;  %v7807_v51 = vpack.c.bf16 %v10662_v13, %v10661_v58  ;;  %v7855_v10 = vpack.c.bf16 %v10664_v62, %v10663_v29  ;;  %v519_v29 = vld [vmem:[%s8666_s4 + $0x2b8] sm:$0xff]  ;;  %v10678_v62 = vand.u32 4294901760, %v9410_v60 }
  0xfd   : > { %7832 = vmatprep.subr.bf16.mxu1 %v7831_v49  ;;  %2991 = vmatmul.mubr.f32.vlgmr.msra.gmra.mrb[4].mxu0 %v8801_v32  ;;  %v3618_v49 = vand.u32 4294901760, %v3617_v38 }
  0xfe   : > { %7786 = vmatpush1.bf16.msra.mxu0 %v7785_v44  ;;  %3560 = vmatmul.mubr.f32.vlgmr.msra.gmra.mrb[4].mxu1 %v8801_v32  ;;  %v7793_v44 = vpack.c.bf16 %v9286_v55, %v9282_v48  ;;  %v10671_v48 = vand.u32 4294901760, %v9312_v7 }
  0xff   : > { %7834 = vmatpush1.bf16.msra.mxu1 %v7833_v45  ;;  %7788 = vmatprep.subr.bf16.mxu0 %v7787_v26  ;;  %v7791_v26 = vpack.c.bf16 %v9266_v31, %v9264_v47  ;;  %v7841_v45 = vpack.c.bf16 %v9295_v40, %v9293_v18  ;;  %v10667_v47 = vand.u32 4294901760, %v9293_v18  ;;  %v10668_v31 = vand.u32 4294901760, %v9295_v40  ;;  %v10673_v40 = vld [vmem:[#allocation3_spill] sm:$0xff] }
 0x100   : > { %7836 = vmatprep.subr.bf16.mxu1 %v7835_v52  ;;  %3111 = vmatprep.mubr.f32.mxu0 %v10639_v15  ;;  %v10666_v52 = vand.u32 4294901760, %v9286_v55  ;;  %v10672_v55 = vand.u32 4294901760, %v9314_v23 }
 0x101   : > { %3680 = vmatprep.mubr.f32.mxu1 %v10639_v15 }
 0x102   : > { %7790 = vmatpush1.bf16.msra.mxu0 %v7789_v12  ;;  %v7809_v38 = vpack.c.bf16 %v10666_v52, %v10665_v41  ;;  %v7857_v12 = vpack.c.bf16 %v10668_v31, %v10667_v47  ;;  %v7859_v18 = vpack.c.bf16 %v10672_v55, %v10671_v48  ;;  %v492_v47 = vld [vmem:[%s8666_s4 + $0x1e0] sm:$0xff]  ;;  %v4630_v55 = vand.u32 4294901760, %v519_v29 }
 0x103   : > { %7838 = vmatpush1.bf16.msra.mxu1 %v7837_v28  ;;  %3050 = vmatprep.subr.mxu0 %v3049_v57  ;;  %v10670_v28 = vand.u32 4294901760, %v9304_v22  ;;  %v469_v57 = vld [vmem:[%s8666_s4 + $0x128] sm:$0xff]  ;;  %v10674_v22 = vand.u32 4294901760, %v9321_v63  ;;  %v4618_v63 = vand.u32 4294901760, %v447_v46  ;;  %v516_v31 = vld [vmem:[%s8666_s4 + $0x2a0] sm:$0xff] }
 0x104   : > { %3619 = vmatprep.subr.mxu1 %v3618_v49  ;;  %v10675_v49 = vand.u32 4294901760, %v9328_v20  ;;  %v4053_v23 = vand.u32 4294901760, %v469_v57  ;;  %v4622_v20 = vand.u32 4294901760, %v471_v1 }
 0x105   : > { %v7811_v33 = vpack.c.bf16 %v10670_v28, %v10669_v2  ;;  %v9569_v28 = vsub.f32 %v447_v46, %v4618_v63  ;;  %v4063_v46 = vand.u32 4294901760, %v516_v31 }
 0x106   : > { %3056 = vmatpush1.msra.mxu0 %v3055_v4  ;;  %v7813_v7 = vpack.c.bf16 %v10675_v49, %v10674_v22  ;;  %v4049_v4 = vand.u32 4294901760, %v445_v3  ;;  %v9567_v2 = vpack.c.bf16 %v4622_v20, %v4618_v63  ;;  %v518_v22 = vld [vmem:[%s8666_s4 + $0x2b0] sm:$0xff] }
 0x107   : > { %3625 = vmatpush1.msra.mxu1 %v3624_v37  ;;  %7792 = vmatprep.subr.bf16.mxu0 %v7791_v26  ;;  %v444_v37 = vld [vmem:[%s8666_s4 + $0x60] sm:$0xff] }
 0x108   : > { %7840 = vmatprep.subr.bf16.mxu1 %v7839_v34  ;;  %3113 = vmatmul.mubr.f32.vlgmr.msra.gmra.mrb[4].mxu0 %v8664_v59  ;;  %v468_v26 = vld [vmem:[%s8666_s4 + $0x120] sm:$0xff]  ;;  %v10676_v34 = vand.u32 4294901760, %v9332_v24  ;;  %v4051_v58 = vand.u32 4294901760, %v444_v37  ;;  %v9555_v13 = vsub.f32 %v445_v3, %v4049_v4 }
 0x109   : > { %7794 = vmatpush1.bf16.msra.mxu0 %v7793_v44  ;;  %3682 = vmatmul.mubr.f32.vlgmr.msra.gmra.mrb[4].mxu1 %v8664_v59  ;;  %v10677_v44 = vand.u32 4294901760, %v9336_v0  ;;  %v4055_v24 = vand.u32 4294901760, %v468_v26  ;;  %v9553_v0 = vpack.c.bf16 %v4053_v23, %v4049_v4 }
 0x10a   : > { %7842 = vmatpush1.bf16.msra.mxu1 %v7841_v45  ;;  %7796 = vmatprep.subr.bf16.mxu0 %v7795_v30  ;;  %v446_v30 = vld [vmem:[%s8666_s4 + $0x70] sm:$0xff]  ;;  %v9575_v3 = vsub.f32 %v444_v37, %v4051_v58 }
 0x10b   : > { %7844 = vmatprep.subr.bf16.mxu1 %v7843_v43  ;;  %3203 = vmatprep.mubr.f32.mxu0 %v10639_v15  ;;  %v7861_v45 = vpack.c.bf16 %v10677_v44, %v10676_v34  ;;  %v470_v43 = vld [vmem:[%s8666_s4 + $0x130] sm:$0xff]  ;;  %v9609_v34 = vsub.f32 %v519_v29, %v4630_v55  ;;  %v10586_v44 = vand.u32 4294901760, %v9555_v13 }
 0x10c   : > { %3772 = vmatprep.mubr.f32.mxu1 %v10639_v15  ;;  %v4624_v41 = vand.u32 4294901760, %v470_v43 }
 0x10d   : > { %7798 = vmatpush1.bf16.msra.mxu0 %v7797_v27  ;;  %v493_v27 = vld [vmem:[%s8666_s4 + $0x1e8] sm:$0xff]  ;;  %v9645_v29 = vsub.f32 %v9555_v13, %v10586_v44 }
 0x10e   : > { %7846 = vmatpush1.bf16.msra.mxu1 %v7845_v5  ;;  %3145 = vmatprep.subr.mxu0 %v9410_v60  ;;  %v517_v5 = vld [vmem:[%s8666_s4 + $0x2a8] sm:$0xff]  ;;  %v4057_v52 = vand.u32 4294901760, %v493_v27  ;;  %v9573_v60 = vpack.c.bf16 %v4055_v24, %v4051_v58  ;;  %v9590_v49 = vsub.f32 %v470_v43, %v4624_v41  ;;  %v10579_v58 = vand.u32 4294901760, %v9569_v28 }
 0x10f   : > { %3714 = vmatprep.subr.mxu1 %v9421_v17  ;;  %v9581_v17 = vsub.f32 %v468_v26, %v4055_v24 }
 0x111   : > { %3148 = vmatpush1.msra.mxu0 %v9367_v53 }
 0x112   : > { %3717 = vmatpush1.msra.mxu1 %v9434_v36  ;;  %7800 = vmatprep.subr.bf16.mxu0 %v9258_v16 }
 0x113   : > { %7848 = vmatprep.subr.bf16.mxu1 %v9268_v54  ;;  %3206 = vmatmul.mubr.f32.vlgmr.msra.gmra.mrb[4].mxu0 %v8678_v11 }
 0x114   : > { %7802 = vmatpush1.bf16.msra.mxu0 %v9280_v39  ;;  %3775 = vmatmul.mubr.f32.vlgmr.msra.gmra.mrb[4].mxu1 %v8678_v11 }
 0x115   : > { %7850 = vmatpush1.bf16.msra.mxu1 %v9288_v25  ;;  %7804 = vmatprep.subr.bf16.mxu0 %v9300_v56 }
 0x116   : > { %7852 = vmatprep.subr.bf16.mxu1 %v9310_v19  ;;  %3286 = vmatprep.mubr.f32.mxu0 %v10639_v15 }
 0x117   : > { %3855 = vmatprep.mubr.f32.mxu1 %v10639_v15 }
 0x118   : > { %7806 = vmatpush1.bf16.msra.mxu0 %v9319_v42 }
 0x119   : > { %7854 = vmatpush1.bf16.msra.mxu1 %v10660_v9  ;;  %3229 = vmatprep.subr.mxu0 %v9360_v50 }
 0x11a   : > { %3798 = vmatprep.subr.mxu1 %v9362_v21 }
 0x11c   : > { %3231 = vmatpush1.msra.mxu0 %v9346_v35 }
 0x11d   : > { %3800 = vmatpush1.msra.mxu1 %v9369_v14  ;;  %7808 = vmatprep.subr.bf16.mxu0 %v7807_v51  ;;  %v495_v51 = vld [vmem:[%s8666_s4 + $0x1f8] sm:$0xff] }
 0x11e   : > { %7856 = vmatprep.subr.bf16.mxu1 %v7855_v10  ;;  %3290 = vmatmul.mubr.f32.vlgmr.msra.gmra.mrb[4].mxu0 %v10673_v40  ;;  %v4620_v10 = vand.u32 4294901760, %v446_v30  ;;  %v4626_v48 = vand.u32 4294901760, %v495_v51 }
 0x11f   : > { %7810 = vmatpush1.bf16.msra.mxu0 %v7809_v38  ;;  %3859 = vmatmul.mubr.f32.vlgmr.msra.gmra.mrb[4].mxu1 %v10673_v40  ;;  %v4061_v38 = vand.u32 4294901760, %v517_v5 }
 0x120   : > { %7858 = vmatpush1.bf16.msra.mxu1 %v7857_v12  ;;  %7812 = vmatprep.subr.bf16.mxu0 %v7811_v33  ;;  %v9565_v12 = vsub.f32 %v469_v57, %v4053_v23  ;;  %v9571_v33 = vsub.f32 %v471_v1, %v4622_v20  ;;  %v4059_v57 = vand.u32 4294901760, %v492_v47  ;;  %v9588_v1 = vpack.c.bf16 %v4624_v41, %v4620_v10  ;;  %v541_v23 = vld [vmem:[%s8666_s4 + $0x368] sm:$0xf] }
 0x121   : > { %7860 = vmatprep.subr.bf16.mxu1 %v7859_v18  ;;  %3390 = vmatprep.mubr.f32.mxu0 %v10639_v15  ;;  %v494_v18 = vld [vmem:[%s8666_s4 + $0x1f0] sm:$0xff]  ;;  %v9592_v53 = vpack.c.bf16 %v4061_v38, %v4057_v52  ;;  %v9599_v4 = vsub.f32 %v517_v5, %v4061_v38  ;;  %v9605_v37 = vpack.c.bf16 %v4630_v55, %v4626_v48 }
 0x122   : > { %3959 = vmatprep.mubr.f32.mxu1 %v10639_v15  ;;  %v4628_v36 = vand.u32 4294901760, %v494_v18  ;;  %v9607_v26 = vsub.f32 %v495_v51, %v4626_v48  ;;  %v10585_v63 = vand.u32 4294901760, %v9565_v12  ;;  %v9623_v20 = vsub.f32 %v516_v31, %v4063_v46 }
 0x123   : > { %7814 = vmatpush1.bf16.msra.mxu0 %v7813_v7  ;;  %v9597_v7 = vsub.f32 %v493_v27, %v4057_v52  ;;  %v10572_v52 = vand.u32 4294901760, %v9590_v49  ;;  %v4707_v55 = vsub.f32 %v9569_v28, %v10579_v58 }
 0x124   : > { %7862 = vmatpush1.bf16.msra.mxu1 %v7861_v45  ;;  %3331 = vmatprep.subr.mxu0 %v10678_v62  ;;  %v9615_v45 = vpack.c.bf16 %v4063_v46, %v4059_v57  ;;  %v9625_v43 = vsub.f32 %v494_v18, %v4628_v36  ;;  %v10577_v62 = vand.u32 4294901760, %v9575_v3  ;;  %v4139_v18 = vand.u32 4294901760, %v9645_v29 }
 0x125   : > { %3900 = vmatprep.subr.mxu1 %v3616_v6  ;;  %v9583_v6 = vsub.f32 %v446_v30, %v4620_v10  ;;  %v9617_v30 = vsub.f32 %v492_v47, %v4059_v57  ;;  %v4150_v10 = vsub.f32 %v9565_v12, %v10585_v63  ;;  %v10580_v57 = vand.u32 4294901760, %v9607_v26 }
 0x126   : > { %v10583_v46 = vand.u32 4294901760, %v9609_v34  ;;  %v10584_v29 = vand.u32 4294901760, %v9625_v43 }
 0x127   : > { %3335 = vmatpush1.msra.mxu0 %v3053_v61  ;;  %v540_v61 = vld [vmem:[%s8666_s4 + $0x360] sm:$0xf]  ;;  %v10575_v41 = vand.u32 4294901760, %v9583_v6 }
 0x128   : > { %3904 = vmatpush1.msra.mxu1 %v3622_v8  ;;  %7816 = vmatprep.subr.bf16.mxu0 %v9258_v16  ;;  %v4632_v8 = vand.u32 4294901760, %v518_v22  ;;  %v543_v16 = vld [vmem:[%s8666_s4 + $0x378] sm:$0xf] }
 0x129   : > { %7864 = vmatprep.subr.bf16.mxu1 %v9268_v54  ;;  %3392 = vmatmul.mubr.f32.vlgmr.msra.gmra.mrb[4].mxu0 %v8664_v59  ;;  %v542_v54 = vld [vmem:[%s8666_s4 + $0x370] sm:$0xf] }
 0x12a   : > { %7818 = vmatpush1.bf16.msra.mxu0 %v9280_v39  ;;  %3961 = vmatmul.mubr.f32.vlgmr.msra.gmra.mrb[4].mxu1 %v8664_v59  ;;  %v600_v39 = vsel %vm562_vm1, %v540_v61, 0  ;;  %v9630_v27 = vpack.c.bf16 %v4632_v8, %v4628_v36  ;;  %v9633_v5 = vsel %vm562_vm1, %v542_v54, 0  ;;  %v9638_v24 = vsub.f32 %v518_v22, %v4632_v8 }
 0x12b   : > { %7866 = vmatpush1.bf16.msra.mxu1 %v9288_v25  ;;  %7820 = vmatprep.subr.bf16.mxu0 %v9300_v56  ;;  %v603_v25 = vsel %vm562_vm1, %v541_v23, 0  ;;  %v609_v56 = vsel %vm562_vm1, %v543_v16, 0  ;;  %v9640_v51 = vand.u32 4294901760, %v600_v39  ;;  %v9667_v48 = vand.u32 4294901760, %v9633_v5 }
 0x12c   : > { %7868 = vmatprep.subr.bf16.mxu1 %v9310_v19  ;;  %3472 = vmatprep.mubr.f32.mxu0 %v10639_v15  ;;  %10679 = vst [vmem:[#allocation4_spill] sm:$0xff] %v9630_v27  ;;  %v10578_v19 = vand.u32 4294901760, %v9571_v33  ;;  %v9657_v38 = vand.u32 4294901760, %v603_v25  ;;  %v9659_v47 = vand.u32 4294901760, %v609_v56  ;;  %v4144_v22 = vsub.f32 %v9575_v3, %v10577_v62 }
 0x12d   : > { %4041 = vmatprep.mubr.f32.mxu1 %v10639_v15  ;;  %v9664_v31 = vsub.f32 %v600_v39, %v9640_v51  ;;  %v4151_v61 = vand.u32 4294901760, %v4150_v10  ;;  %v4725_v8 = vsub.f32 %v9590_v49, %v10572_v52  ;;  %v10582_v16 = vand.u32 4294901760, %v9617_v30 }
 0x12e   : > { %7822 = vmatpush1.bf16.msra.mxu0 %v9319_v42  ;;  %v10576_v42 = vand.u32 4294901760, %v9581_v17  ;;  %v10581_v54 = vand.u32 4294901760, %v9623_v20  ;;  %v4708_v39 = vand.u32 4294901760, %v4707_v55  ;;  %v10588_v10 = vand.u32 4294901760, %v9638_v24 }
 0x12f   : > { %7870 = vmatpush1.bf16.msra.mxu1 %v10660_v9  ;;  %3415 = vmatprep.subr.mxu0 %v9360_v50  ;;  %v10574_v9 = vand.u32 4294901760, %v9597_v7  ;;  %v10573_v50 = vand.u32 4294901760, %v9599_v4  ;;  %v9708_v52 = vsub.f32 %v603_v25, %v9657_v38  ;;  %v4743_v55 = vsub.f32 %v9609_v34, %v10583_v46 }
 0x130   : > { %3984 = vmatprep.subr.mxu1 %v9362_v21  ;;  %v4719_v21 = vsub.f32 %v9571_v33, %v10578_v19  ;;  %v4156_v36 = vsub.f32 %v9581_v17, %v10576_v42  ;;  %v4145_v25 = vand.u32 4294901760, %v4144_v22  ;;  %v4726_v19 = vand.u32 4294901760, %v4725_v8 }
 0x131   : > { %v4174_v23 = vsub.f32 %v9599_v4, %v10573_v50  ;;  %v9733_v22 = vsub.f32 %v9633_v5, %v9667_v48 }
 0x132   : > { %3417 = vmatpush1.msra.mxu0 %v9346_v35  ;;  %v4713_v35 = vsub.f32 %v9583_v6, %v10575_v41  ;;  %v4720_v50 = vand.u32 4294901760, %v4719_v21  ;;  %v9719_v41 = vsub.f32 %v609_v56, %v9659_v47  ;;  %v4157_v42 = vand.u32 4294901760, %v4156_v36 }
 0x133   : > { %3986 = vmatpush1.msra.mxu1 %v9369_v14  ;;  %3474 = vmatmul.mubr.f32.vlgmr.msra.gmra.mrb[4].mxu0 %v8664_v59  ;;  %v4162_v14 = vsub.f32 %v9597_v7, %v10574_v9  ;;  %v4731_v9 = vsub.f32 %v9607_v26, %v10580_v57  ;;  %v4175_v58 = vand.u32 4294901760, %v4174_v23  ;;  %v4168_v57 = vsub.f32 %v9617_v30, %v10582_v16 }
 0x134   : > { %4043 = vmatmul.mubr.f32.vlgmr.msra.gmra.mrb[4].mxu1 %v8664_v59  ;;  %7872 = vmatprep.subr.bf16.mxu0 %v9553_v0  ;;  %v4714_v62 = vand.u32 4294901760, %v4713_v35  ;;  %v4180_v56 = vsub.f32 %v9623_v20, %v10581_v54  ;;  %v4737_v36 = vsub.f32 %v9625_v43, %v10584_v29  ;;  %v4749_v35 = vsub.f32 %v9638_v24, %v10588_v10 }
 0x135   : > { %7920 = vmatprep.subr.bf16.mxu1 %v9567_v2  ;;  %7874 = vmatpush1.bf16.msra.mxu0 %v9573_v60  ;;  %v4163_v21 = vand.u32 4294901760, %v4162_v14  ;;  %v7879_v14 = vpack.c.bf16 %v4151_v61, %v4139_v18  ;;  %v4732_v23 = vand.u32 4294901760, %v4731_v9  ;;  %v4744_v54 = vand.u32 4294901760, %v4743_v55 }
 0x136   : > { %7922 = vmatpush1.bf16.msra.mxu1 %v9588_v1  ;;  %7876 = vmatprep.subr.bf16.mxu0 %v9592_v53  ;;  %v4754_v5 = vand.u32 4294901760, %v9719_v41  ;;  %v7927_v16 = vpack.c.bf16 %v4720_v50, %v4708_v39  ;;  %v7881_v46 = vpack.c.bf16 %v4157_v42, %v4145_v25  ;;  %v7929_v29 = vpack.c.bf16 %v4726_v19, %v4714_v62 }
 0x137   : > { %7924 = vmatprep.subr.bf16.mxu1 %v9605_v37  ;;  %4123 = vmatprep.mubr.f32.mxu0 %v10639_v15  ;;  %v7883_v63 = vpack.c.bf16 %v4175_v58, %v4163_v21  ;;  %v4169_v44 = vand.u32 4294901760, %v4168_v57  ;;  %v4181_v40 = vand.u32 4294901760, %v4180_v56  ;;  %v4191_v10 = vand.u32 4294901760, %v9664_v31  ;;  %v10681_v56 = vld [vmem:[#allocation4_spill] sm:$0xff] }
 0x138   : > { %4692 = vmatprep.mubr.f32.mxu1 %v10639_v15  ;;  %v4738_v8 = vand.u32 4294901760, %v4737_v36  ;;  %v10680_v18 = vand.u32 4294901760, %v9708_v52  ;;  %v4760_v61 = vand.u32 4294901760, %v9733_v22  ;;  %v7931_v42 = vpack.c.bf16 %v4744_v54, %v4732_v23 }
 0x139   : > { %7878 = vmatpush1.bf16.msra.mxu0 %v9615_v45  ;;  %v4755_v58 = vsub.f32 %v9719_v41, %v4754_v5  ;;  %v7885_v19 = vpack.c.bf16 %v4181_v40, %v4169_v44  ;;  %v4192_v62 = vsub.f32 %v9664_v31, %v4191_v10  ;;  %v7937_v39 = vpack.c.bf16 %v9590_v49, %v9583_v6 }
 0x13a   : > { %7926 = vmatpush1.bf16.msra.mxu1 %v9630_v27  ;;  %4066 = vmatprep.subr.mxu0 %v9657_v38  ;;  %v4750_v27 = vand.u32 4294901760, %v4749_v35  ;;  %v4186_v9 = vsub.f32 %v9708_v52, %v10680_v18  ;;  %v4761_v54 = vsub.f32 %v9733_v22, %v4760_v61  ;;  %v7939_v55 = vpack.c.bf16 %v9609_v34, %v9607_v26 }
 0x13b   : > { %4635 = vmatprep.subr.mxu1 %v9659_v47  ;;  %v4193_v40 = vand.u32 4294901760, %v4192_v62  ;;  %v7893_v25 = vpack.c.bf16 %v9623_v20, %v9617_v30  ;;  %v7941_v21 = vpack.c.bf16 %v9638_v24, %v9625_v43  ;;  %v10682_v36 = vand.u32 4294901760, %v9555_v13 }
 0x13c   : > { %v7933_v50 = vpack.c.bf16 %v4750_v27, %v4738_v8  ;;  %v4187_v57 = vand.u32 4294901760, %v4186_v9  ;;  %v4762_v44 = vand.u32 4294901760, %v4761_v54  ;;  %v7935_v27 = vpack.c.bf16 %v9571_v33, %v9569_v28  ;;  %v451_v54 = vld [vmem:[%s8666_s4 + $0x98] sm:$0xff] }
 0x13d   : > { %4068 = vmatpush1.msra.mxu0 %v9640_v51  ;;  %v10683_v35 = vand.u32 4294901760, %v9565_v12  ;;  %v10685_v23 = vand.u32 4294901760, %v9571_v33  ;;  %v10686_v9 = vand.u32 4294901760, %v9575_v3  ;;  %v473_v33 = vld [vmem:[%s8666_s4 + $0x148] sm:$0xff] }
 0x13e   : > { %4637 = vmatpush1.msra.mxu1 %v9667_v48  ;;  %7880 = vmatprep.subr.bf16.mxu0 %v7879_v14  ;;  %v10684_v14 = vand.u32 4294901760, %v9569_v28  ;;  %v10691_v28 = vand.u32 4294901760, %v9599_v4 }
 0x13f   : > { %7928 = vmatprep.subr.bf16.mxu1 %v7927_v16  ;;  %4129 = vmatmul.mubr.f32.vlgmr.msra.gmra.mrb[6].mxu0 %v8801_v32  ;;  %v4756_v16 = vand.u32 4294901760, %v4755_v58  ;;  %v7903_v8 = vpack.c.bf16 %v10683_v35, %v10682_v36  ;;  %v497_v36 = vld [vmem:[%s8666_s4 + $0x208] sm:$0xff] }
 0x140   : > { %7882 = vmatpush1.bf16.msra.mxu0 %v7881_v46  ;;  %4698 = vmatmul.mubr.f32.vlgmr.msra.gmra.mrb[6].mxu1 %v8801_v32  ;;  %v7889_v46 = vpack.c.bf16 %v9581_v17, %v9575_v3  ;;  %v7951_v18 = vpack.c.bf16 %v10685_v23, %v10684_v14  ;;  %v10692_v3 = vand.u32 4294901760, %v9607_v26  ;;  %v521_v35 = vld [vmem:[%s8666_s4 + $0x2c8] sm:$0xff]  ;;  %v523_v14 = vld [vmem:[%s8666_s4 + $0x2d8] sm:$0xff] }
 0x141   : > { %7930 = vmatpush1.bf16.msra.mxu1 %v7929_v29  ;;  %7884 = vmatprep.subr.bf16.mxu0 %v7883_v63  ;;  %v7887_v63 = vpack.c.bf16 %v9565_v12, %v9555_v13  ;;  %v7891_v29 = vpack.c.bf16 %v9599_v4, %v9597_v7  ;;  %v10688_v13 = vand.u32 4294901760, %v9583_v6  ;;  %v10689_v12 = vand.u32 4294901760, %v9590_v49  ;;  %v448_v6 = vld [vmem:[%s8666_s4 + $0x80] sm:$0xff] }
 0x142   : > { %7932 = vmatprep.subr.bf16.mxu1 %v7931_v42  ;;  %4249 = vmatprep.mubr.f32.mxu0 %v10639_v15  ;;  %v10687_v42 = vand.u32 4294901760, %v9581_v17  ;;  %v10693_v17 = vand.u32 4294901760, %v9609_v34  ;;  %v472_v49 = vld [vmem:[%s8666_s4 + $0x140] sm:$0xff]  ;;  %v10695_v4 = vand.u32 4294901760, %v9617_v30  ;;  %v5191_v34 = vand.u32 4294901760, %v473_v33 }
 0x143   : > { %4818 = vmatprep.mubr.f32.mxu1 %v10639_v15  ;;  %v7953_v62 = vpack.c.bf16 %v10689_v12, %v10688_v13  ;;  %v10698_v30 = vand.u32 4294901760, %v9638_v24  ;;  %v496_v12 = vld [vmem:[%s8666_s4 + $0x200] sm:$0xff] }
 0x144   : > { %7886 = vmatpush1.bf16.msra.mxu0 %v7885_v19  ;;  %v7905_v58 = vpack.c.bf16 %v10687_v42, %v10686_v9  ;;  %v449_v19 = vld [vmem:[%s8666_s4 + $0x88] sm:$0xff]  ;;  %v10699_v9 = vand.u32 4294901760, %v9708_v52 }
 0x145   : > { %7934 = vmatpush1.bf16.msra.mxu1 %v7933_v50  ;;  %4188 = vmatprep.subr.mxu0 %v4187_v57  ;;  %v10690_v50 = vand.u32 4294901760, %v9597_v7  ;;  %v10694_v7 = vld [vmem:[#allocation3_spill] sm:$0xff]  ;;  %v5187_v26 = vand.u32 4294901760, %v449_v19 }
 0x146   : > { %4757 = vmatprep.subr.mxu1 %v4756_v16  ;;  %v475_v16 = vld [vmem:[%s8666_s4 + $0x158] sm:$0xff] }
 0x147   : > { %v7907_v57 = vpack.c.bf16 %v10691_v28, %v10690_v50  ;;  %v9860_v42 = vsub.f32 %v449_v19, %v5187_v26  ;;  %v5195_v50 = vand.u32 4294901760, %v497_v36  ;;  %v5199_v28 = vand.u32 4294901760, %v521_v35 }
 0x148   : > { %4194 = vmatpush1.msra.mxu0 %v4193_v40  ;;  %v7955_v40 = vpack.c.bf16 %v10693_v17, %v10692_v3  ;;  %v5768_v3 = vand.u32 4294901760, %v523_v14  ;;  %v498_v17 = vld [vmem:[%s8666_s4 + $0x210] sm:$0xff] }
 0x149   : > { %4763 = vmatpush1.msra.mxu1 %v4762_v44  ;;  %7888 = vmatprep.subr.bf16.mxu0 %v7887_v63  ;;  %v10696_v44 = vand.u32 4294901760, %v9623_v20  ;;  %v5189_v20 = vand.u32 4294901760, %v448_v6 }
 0x14a   : > { %7936 = vmatprep.subr.bf16.mxu1 %v7935_v27  ;;  %4251 = vmatmul.mubr.f32.vlgmr.msra.gmra.mrb[6].mxu0 %v8664_v59  ;;  %v5756_v27 = vand.u32 4294901760, %v451_v54 }
 0x14b   : > { %7890 = vmatpush1.bf16.msra.mxu0 %v7889_v46  ;;  %4820 = vmatmul.mubr.f32.vlgmr.msra.gmra.mrb[6].mxu1 %v8664_v59  ;;  %v7909_v63 = vpack.c.bf16 %v10696_v44, %v10695_v4  ;;  %v5760_v46 = vand.u32 4294901760, %v475_v16  ;;  %v5197_v44 = vand.u32 4294901760, %v496_v12 }
 0x14c   : > { %7938 = vmatpush1.bf16.msra.mxu1 %v7937_v39  ;;  %7892 = vmatprep.subr.bf16.mxu0 %v7891_v29  ;;  %v10697_v39 = vand.u32 4294901760, %v9625_v43  ;;  %v9854_v43 = vpack.c.bf16 %v5191_v34, %v5187_v26  ;;  %v545_v26 = vld [vmem:[%s8666_s4 + $0x388] sm:$0xf] }
 0x14d   : > { %7940 = vmatprep.subr.bf16.mxu1 %v7939_v55  ;;  %4341 = vmatprep.mubr.f32.mxu0 %v10639_v15  ;;  %v5193_v55 = vand.u32 4294901760, %v472_v49  ;;  %v9856_v24 = vpack.c.bf16 %v5760_v46, %v5756_v27  ;;  %v9874_v19 = vsub.f32 %v475_v16, %v5760_v46  ;;  %v9892_v16 = vsub.f32 %v497_v36, %v5195_v50 }
 0x14e   : > { %4910 = vmatprep.mubr.f32.mxu1 %v10639_v15  ;;  %v7957_v29 = vpack.c.bf16 %v10698_v30, %v10697_v39  ;;  %v10605_v46 = vand.u32 4294901760, %v9860_v42  ;;  %v9916_v30 = vsub.f32 %v496_v12, %v5197_v44 }
 0x14f   : > { %7894 = vmatpush1.bf16.msra.mxu0 %v7893_v25  ;;  %v450_v25 = vld [vmem:[%s8666_s4 + $0x90] sm:$0xff]  ;;  %v9864_v13 = vpack.c.bf16 %v5193_v55, %v5189_v20  ;;  %v9878_v4 = vsub.f32 %v472_v49, %v5193_v55  ;;  %v9897_v49 = vpack.c.bf16 %v5199_v28, %v5195_v50 }
 0x150   : > { %7942 = vmatpush1.bf16.msra.mxu1 %v7941_v21  ;;  %4283 = vmatprep.subr.mxu0 %v9708_v52  ;;  %v474_v21 = vld [vmem:[%s8666_s4 + $0x150] sm:$0xff]  ;;  %v5758_v23 = vand.u32 4294901760, %v450_v25  ;;  %v9872_v52 = vsub.f32 %v451_v54, %v5756_v27  ;;  %v615_v27 = vsel %vm562_vm1, %v545_v26, 0 }
 0x151   : > { %4852 = vmatprep.subr.mxu1 %v9719_v41 }
 0x152   : > { %v10598_v36 = vand.u32 4294901760, %v9872_v52 }
 0x153   : > { %4286 = vmatpush1.msra.mxu0 %v9664_v31 }
 0x154   : > { %4855 = vmatpush1.msra.mxu1 %v9733_v22  ;;  %7896 = vmatprep.subr.bf16.mxu0 %v9553_v0 }
 0x155   : > { %7944 = vmatprep.subr.bf16.mxu1 %v9567_v2  ;;  %4344 = vmatmul.mubr.f32.vlgmr.msra.gmra.mrb[6].mxu0 %v8678_v11 }
 0x156   : > { %7898 = vmatpush1.bf16.msra.mxu0 %v9573_v60  ;;  %4913 = vmatmul.mubr.f32.vlgmr.msra.gmra.mrb[6].mxu1 %v8678_v11 }
 0x157   : > { %7946 = vmatpush1.bf16.msra.mxu1 %v9588_v1  ;;  %7900 = vmatprep.subr.bf16.mxu0 %v9592_v53 }
 0x158   : > { %7948 = vmatprep.subr.bf16.mxu1 %v9605_v37  ;;  %4424 = vmatprep.mubr.f32.mxu0 %v10639_v15 }
 0x159   : > { %4993 = vmatprep.mubr.f32.mxu1 %v10639_v15 }
 0x15a   : > { %7902 = vmatpush1.bf16.msra.mxu0 %v9615_v45 }
 0x15b   : > { %7950 = vmatpush1.bf16.msra.mxu1 %v10681_v56  ;;  %4367 = vmatprep.subr.mxu0 %v9657_v38 }
 0x15c   : > { %4936 = vmatprep.subr.mxu1 %v9659_v47 }
 0x15e   : > { %4369 = vmatpush1.msra.mxu0 %v9640_v51 }
 0x15f   : > { %4938 = vmatpush1.msra.mxu1 %v9667_v48  ;;  %7904 = vmatprep.subr.bf16.mxu0 %v7903_v8  ;;  %v499_v8 = vld [vmem:[%s8666_s4 + $0x218] sm:$0xff] }
 0x160   : > { %7952 = vmatprep.subr.bf16.mxu1 %v7951_v18  ;;  %4428 = vmatmul.mubr.f32.vlgmr.msra.gmra.mrb[6].mxu0 %v10694_v7  ;;  %v5762_v18 = vand.u32 4294901760, %v474_v21 }
 0x161   : > { %7906 = vmatpush1.bf16.msra.mxu0 %v7905_v58  ;;  %4997 = vmatmul.mubr.f32.vlgmr.msra.gmra.mrb[6].mxu1 %v10694_v7  ;;  %v9862_v58 = vsub.f32 %v473_v33, %v5191_v34  ;;  %v9876_v33 = vsub.f32 %v448_v6, %v5189_v20  ;;  %v5766_v6 = vand.u32 4294901760, %v498_v17  ;;  %v9899_v34 = vsub.f32 %v521_v35, %v5199_v28 }
 0x162   : > { %7954 = vmatpush1.bf16.msra.mxu1 %v7953_v62  ;;  %7908 = vmatprep.subr.bf16.mxu0 %v7907_v57  ;;  %v520_v62 = vld [vmem:[%s8666_s4 + $0x2c0] sm:$0xff]  ;;  %v5764_v57 = vand.u32 4294901760, %v499_v8  ;;  %v9882_v41 = vpack.c.bf16 %v5762_v18, %v5758_v23  ;;  %v9890_v54 = vsub.f32 %v474_v21, %v5762_v18  ;;  %v10597_v35 = vand.u32 4294901760, %v9874_v19 }
 0x163   : > { %7956 = vmatprep.subr.bf16.mxu1 %v7955_v40  ;;  %4528 = vmatprep.mubr.f32.mxu0 %v10639_v15  ;;  %v522_v40 = vld [vmem:[%s8666_s4 + $0x2d0] sm:$0xff]  ;;  %v10604_v20 = vand.u32 4294901760, %v9862_v58 }
 0x164   : > { %5097 = vmatprep.mubr.f32.mxu1 %v10639_v15  ;;  %v5770_v31 = vand.u32 4294901760, %v522_v40  ;;  %v9901_v22 = vpack.c.bf16 %v5768_v3, %v5764_v57  ;;  %v10591_v12 = vand.u32 4294901760, %v9890_v54 }
 0x165   : > { %7910 = vmatpush1.bf16.msra.mxu0 %v7909_v63  ;;  %v5201_v63 = vand.u32 4294901760, %v520_v62  ;;  %v5288_v18 = vsub.f32 %v9862_v58, %v10604_v20 }
 0x166   : > { %7958 = vmatpush1.bf16.msra.mxu1 %v7957_v29  ;;  %4469 = vmatprep.subr.mxu0 %v10699_v9  ;;  %v546_v29 = vld [vmem:[%s8666_s4 + $0x390] sm:$0xf] }
 0x167   : > { %5038 = vmatprep.subr.mxu1 %v4754_v5  ;;  %v9884_v5 = vsub.f32 %v450_v25, %v5758_v23  ;;  %v9914_v39 = vpack.c.bf16 %v5201_v63, %v5197_v44  ;;  %v9923_v55 = vsub.f32 %v520_v62, %v5201_v63  ;;  %v9925_v25 = vpack.c.bf16 %v5770_v31, %v5766_v6 }
 0x168   : > { %v10596_v23 = vand.u32 4294901760, %v9876_v33  ;;  %v9954_v62 = vsub.f32 %v522_v40, %v5770_v31  ;;  %v5289_v26 = vand.u32 4294901760, %v5288_v18  ;;  %v5863_v31 = vsub.f32 %v9890_v54, %v10591_v12 }
 0x169   : > { %4473 = vmatpush1.msra.mxu0 %v4191_v10  ;;  %v544_v10 = vld [vmem:[%s8666_s4 + $0x380] sm:$0xf]  ;;  %10700 = vst [vmem:[#allocation4_spill] sm:$0xff] %v9925_v25  ;;  %v10594_v9 = vand.u32 4294901760, %v9884_v5 }
 0x16a   : > { %5042 = vmatpush1.msra.mxu1 %v4760_v61  ;;  %7912 = vmatprep.subr.bf16.mxu0 %v9553_v0  ;;  %v9905_v0 = vsub.f32 %v499_v8, %v5764_v57  ;;  %v9907_v61 = vsub.f32 %v523_v14, %v5768_v3  ;;  %v618_v8 = vsel %vm562_vm1, %v546_v29, 0  ;;  %v9942_v14 = vsub.f32 %v9860_v42, %v10605_v46 }
 0x16b   : > { %7960 = vmatprep.subr.bf16.mxu1 %v9567_v2  ;;  %4530 = vmatmul.mubr.f32.vlgmr.msra.gmra.mrb[6].mxu0 %v8664_v59  ;;  %v547_v2 = vld [vmem:[%s8666_s4 + $0x398] sm:$0xf]  ;;  %v9963_v57 = vand.u32 4294901760, %v618_v8  ;;  %v5845_v3 = vsub.f32 %v9872_v52, %v10598_v36  ;;  %v5282_v40 = vsub.f32 %v9876_v33, %v10596_v23  ;;  %v10607_v18 = vand.u32 4294901760, %v9954_v62 }
 0x16c   : > { %7914 = vmatpush1.bf16.msra.mxu0 %v9573_v60  ;;  %5099 = vmatmul.mubr.f32.vlgmr.msra.gmra.mrb[6].mxu1 %v8664_v59  ;;  %v612_v60 = vsel %vm562_vm1, %v544_v10, 0  ;;  %v621_v21 = vsel %vm562_vm1, %v547_v2, 0  ;;  %v10599_v44 = vand.u32 4294901760, %v9905_v0  ;;  %v10600_v63 = vand.u32 4294901760, %v9907_v61 }
 0x16d   : > { %7962 = vmatpush1.bf16.msra.mxu1 %v9588_v1  ;;  %7916 = vmatprep.subr.bf16.mxu0 %v9592_v53  ;;  %v9927_v1 = vsub.f32 %v498_v17, %v5766_v6  ;;  %v9930_v53 = vand.u32 4294901760, %v615_v27  ;;  %v9956_v50 = vand.u32 4294901760, %v621_v21  ;;  %v5277_v17 = vand.u32 4294901760, %v9942_v14 }
 0x16e   : > { %7964 = vmatprep.subr.bf16.mxu1 %v9605_v37  ;;  %4610 = vmatprep.mubr.f32.mxu0 %v10639_v15  ;;  %v9936_v37 = vand.u32 4294901760, %v612_v60  ;;  %v10602_v2 = vand.u32 4294901760, %v9916_v30  ;;  %v5846_v29 = vand.u32 4294901760, %v5845_v3  ;;  %v5881_v3 = vsub.f32 %v9907_v61, %v10600_v63 }
 0x16f   : > { %5179 = vmatprep.mubr.f32.mxu1 %v10639_v15  ;;  %v10603_v14 = vand.u32 4294901760, %v9927_v1  ;;  %v10004_v12 = vsub.f32 %v615_v27, %v9930_v53  ;;  %v5283_v27 = vand.u32 4294901760, %v5282_v40  ;;  %v10028_v63 = vsub.f32 %v618_v8, %v9963_v57 }
 0x170   : > { %7918 = vmatpush1.bf16.msra.mxu0 %v9615_v45  ;;  %v10595_v45 = vand.u32 4294901760, %v9878_v4  ;;  %v9961_v28 = vsub.f32 %v612_v60, %v9936_v37  ;;  %v10601_v60 = vand.u32 4294901760, %v9923_v55 }
 0x171   : > { %7966 = vmatpush1.bf16.msra.mxu1 %v10681_v56  ;;  %4553 = vmatprep.subr.mxu0 %v9657_v38  ;;  %v10593_v56 = vand.u32 4294901760, %v9892_v16  ;;  %v10592_v38 = vand.u32 4294901760, %v9899_v34  ;;  %v5875_v40 = vsub.f32 %v9927_v1, %v10603_v14 }
 0x172   : > { %5122 = vmatprep.subr.mxu1 %v9659_v47  ;;  %v5857_v47 = vsub.f32 %v9874_v19, %v10597_v35  ;;  %v5294_v6 = vsub.f32 %v9878_v4, %v10595_v45  ;;  %v5864_v35 = vand.u32 4294901760, %v5863_v31  ;;  %v7975_v31 = vpack.c.bf16 %v5289_v26, %v5277_v17 }
 0x173   : > { %v5312_v10 = vsub.f32 %v9899_v34, %v10592_v38  ;;  %v10701_v17 = vand.u32 4294901760, %v10004_v12  ;;  %v5898_v26 = vand.u32 4294901760, %v10028_v63 }
 0x174   : > { %4555 = vmatpush1.msra.mxu0 %v9640_v51  ;;  %v5851_v51 = vsub.f32 %v9884_v5, %v10594_v9  ;;  %v5858_v38 = vand.u32 4294901760, %v5857_v47  ;;  %v10015_v9 = vsub.f32 %v621_v21, %v9956_v50  ;;  %v5295_v45 = vand.u32 4294901760, %v5294_v6 }
 0x175   : > { %5124 = vmatpush1.msra.mxu1 %v9667_v48  ;;  %4612 = vmatmul.mubr.f32.vlgmr.msra.gmra.mrb[6].mxu0 %v8664_v59  ;;  %v5300_v48 = vsub.f32 %v9892_v16, %v10593_v56  ;;  %v5869_v56 = vsub.f32 %v9905_v0, %v10599_v44  ;;  %v5313_v36 = vand.u32 4294901760, %v5312_v10  ;;  %v5306_v44 = vsub.f32 %v9916_v30, %v10602_v2 }
 0x176   : > { %5181 = vmatmul.mubr.f32.vlgmr.msra.gmra.mrb[6].mxu1 %v8664_v59  ;;  %7968 = vmatprep.subr.bf16.mxu0 %v9854_v43  ;;  %v5852_v23 = vand.u32 4294901760, %v5851_v51  ;;  %v5318_v21 = vsub.f32 %v9923_v55, %v10601_v60  ;;  %v5887_v6 = vsub.f32 %v9954_v62, %v10607_v18  ;;  %v5882_v10 = vand.u32 4294901760, %v5881_v3 }
 0x177   : > { %8016 = vmatprep.subr.bf16.mxu1 %v9856_v24  ;;  %7970 = vmatpush1.bf16.msra.mxu0 %v9864_v13  ;;  %v5301_v47 = vand.u32 4294901760, %v5300_v48  ;;  %v5870_v48 = vand.u32 4294901760, %v5869_v56  ;;  %v5892_v8 = vand.u32 4294901760, %v10015_v9  ;;  %v8023_v60 = vpack.c.bf16 %v5858_v38, %v5846_v29 }
 0x178   : > { %8018 = vmatpush1.bf16.msra.mxu1 %v9882_v41  ;;  %7972 = vmatprep.subr.bf16.mxu0 %v9897_v49  ;;  %v7977_v2 = vpack.c.bf16 %v5295_v45, %v5283_v27  ;;  %v8025_v14 = vpack.c.bf16 %v5864_v35, %v5852_v23  ;;  %v5307_v46 = vand.u32 4294901760, %v5306_v44  ;;  %v5319_v7 = vand.u32 4294901760, %v5318_v21 }
 0x179   : > { %8020 = vmatprep.subr.bf16.mxu1 %v9901_v22  ;;  %5261 = vmatprep.mubr.f32.mxu0 %v10639_v15  ;;  %v7979_v20 = vpack.c.bf16 %v5313_v36, %v5301_v47  ;;  %v5329_v18 = vand.u32 4294901760, %v9961_v28  ;;  %v5876_v51 = vand.u32 4294901760, %v5875_v40  ;;  %v5324_v56 = vsub.f32 %v10004_v12, %v10701_v17 }
 0x17a   : > { %5830 = vmatprep.mubr.f32.mxu1 %v10639_v15  ;;  %v8027_v45 = vpack.c.bf16 %v5882_v10, %v5870_v48  ;;  %v5893_v36 = vsub.f32 %v10015_v9, %v5892_v8  ;;  %v7981_v35 = vpack.c.bf16 %v5319_v7, %v5307_v46  ;;  %v8031_v27 = vpack.c.bf16 %v9874_v19, %v9872_v52  ;;  %v10704_v48 = vld [vmem:[#allocation4_spill] sm:$0xff] }
 0x17b   : > { %7974 = vmatpush1.bf16.msra.mxu0 %v9914_v39  ;;  %v5330_v23 = vsub.f32 %v9961_v28, %v5329_v18  ;;  %v5325_v29 = vand.u32 4294901760, %v5324_v56  ;;  %v7985_v47 = vpack.c.bf16 %v9878_v4, %v9876_v33  ;;  %v8033_v21 = vpack.c.bf16 %v9890_v54, %v9884_v5 }
 0x17c   : > { %8022 = vmatpush1.bf16.msra.mxu1 %v9925_v25  ;;  %5204 = vmatprep.subr.mxu0 %v9930_v53  ;;  %v5888_v25 = vand.u32 4294901760, %v5887_v6  ;;  %v5894_v7 = vand.u32 4294901760, %v5893_v36  ;;  %v7987_v40 = vpack.c.bf16 %v9899_v34, %v9892_v16  ;;  %v8035_v6 = vpack.c.bf16 %v9907_v61, %v9905_v0 }
 0x17d   : > { %5773 = vmatprep.subr.mxu1 %v9956_v50  ;;  %v10705_v10 = vand.u32 4294901760, %v9860_v42  ;;  %v10706_v17 = vand.u32 4294901760, %v9862_v58  ;;  %v10708_v36 = vand.u32 4294901760, %v9874_v19  ;;  %v477_v19 = vld [vmem:[%s8666_s4 + $0x168] sm:$0xff] }
 0x17e   : > { %v8029_v44 = vpack.c.bf16 %v5888_v25, %v5876_v51  ;;  %v7989_v51 = vpack.c.bf16 %v9923_v55, %v9916_v30 }
 0x17f   : > { %5206 = vmatpush1.msra.mxu0 %v9936_v37  ;;  %v7999_v56 = vpack.c.bf16 %v10706_v17, %v10705_v10 }
 0x180   : > { %5775 = vmatpush1.msra.mxu1 %v9963_v57  ;;  %7976 = vmatprep.subr.bf16.mxu0 %v7975_v31  ;;  %v8037_v31 = vpack.c.bf16 %v9954_v62, %v9927_v1 }
 0x181   : > { %8024 = vmatprep.subr.bf16.mxu1 %v8023_v60  ;;  %5267 = vmatmul.mubr.f32.vlgmr.msra.gmra.mrb[8].mxu0 %v8801_v32  ;;  %v5899_v60 = vsub.f32 %v10028_v63, %v5898_v26 }
 0x182   : > { %7978 = vmatpush1.bf16.msra.mxu0 %v7977_v2  ;;  %5836 = vmatmul.mubr.f32.vlgmr.msra.gmra.mrb[8].mxu1 %v8801_v32  ;;  %v10056_v38 = vpop.f32.mrb[0].mxu0 }
 0x183   : > { %8026 = vmatpush1.bf16.msra.mxu1 %v8025_v14  ;;  %7980 = vmatprep.subr.bf16.mxu0 %v7979_v20  ;;  %v10061_v3 = vpop.f32.mrb[0].mxu1  ;;  %v10063_v2 = vpop.f32.mrb[1].mxu0  ;;  %v5331_v20 = vand.u32 4294901760, %v5330_v23  ;;  %v5900_v25 = vand.u32 4294901760, %v5899_v60  ;;  %v7983_v14 = vpack.c.bf16 %v9862_v58, %v9860_v42  ;;  %v10709_v23 = vand.u32 4294901760, %v9876_v33  ;;  %v453_v60 = vld [vmem:[%s8666_s4 + $0xa8] sm:$0xff] }
 0x184   : > { %10702 = vst [vmem:[#allocation5_spill] sm:$0xff] %v10061_v3  ;;  %8028 = vmatprep.subr.bf16.mxu1 %v8027_v45  ;;  %5387 = vmatprep.mubr.f32.mxu0 %v10639_v15  ;;  %v10066_v46 = vpop.f32.mrb[1].mxu1  ;;  %v10707_v45 = vand.u32 4294901760, %v9872_v52  ;;  %v10711_v42 = vand.u32 4294901760, %v9884_v5  ;;  %v10712_v58 = vand.u32 4294901760, %v9890_v54  ;;  %v10714_v52 = vand.u32 4294901760, %v9899_v34 }
 0x185   : > { %10703 = vst [vmem:[#allocation6_spill] sm:$0xff] %v10066_v46  ;;  %5956 = vmatprep.mubr.f32.mxu1 %v10639_v15  ;;  %v10715_v33 = vand.u32 4294901760, %v9905_v0  ;;  %v452_v5 = vld [vmem:[%s8666_s4 + $0xa0] sm:$0xff]  ;;  %v10718_v34 = vand.u32 4294901760, %v9916_v30  ;;  %v6325_v0 = vand.u32 4294901760, %v453_v60  ;;  %v10721_v30 = vand.u32 4294901760, %v9954_v62 }
 0x186   : > { %7982 = vmatpush1.bf16.msra.mxu0 %v7981_v35  ;;  %v8047_v35 = vpack.c.bf16 %v10708_v36, %v10707_v45  ;;  %v476_v54 = vld [vmem:[%s8666_s4 + $0x160] sm:$0xff]  ;;  %v478_v45 = vld [vmem:[%s8666_s4 + $0x170] sm:$0xff]  ;;  %v501_v36 = vld [vmem:[%s8666_s4 + $0x228] sm:$0xff] }
 0x187   : > { %8030 = vmatpush1.bf16.msra.mxu1 %v8029_v44  ;;  %5326 = vmatprep.subr.mxu0 %v5325_v29  ;;  %v10710_v44 = vand.u32 4294901760, %v9878_v4  ;;  %v10716_v4 = vand.u32 4294901760, %v9907_v61  ;;  %v6329_v61 = vand.u32 4294901760, %v477_v19  ;;  %v6331_v17 = vand.u32 4294901760, %v476_v54 }
 0x188   : > { %5895 = vmatprep.subr.mxu1 %v5894_v7  ;;  %v8049_v7 = vpack.c.bf16 %v10712_v58, %v10711_v42  ;;  %v6900_v42 = vand.u32 4294901760, %v478_v45  ;;  %v10722_v58 = vand.u32 4294901760, %v10004_v12 }
 0x189   : > { %v8001_v29 = vpack.c.bf16 %v10710_v44, %v10709_v23  ;;  %v503_v23 = vld [vmem:[%s8666_s4 + $0x238] sm:$0xff] }
 0x18a   : > { %5332 = vmatpush1.msra.mxu0 %v5331_v20  ;;  %v10713_v20 = vand.u32 4294901760, %v9892_v16  ;;  %v10717_v16 = vld [vmem:[#allocation3_spill] sm:$0xff]  ;;  %v527_v44 = vld [vmem:[%s8666_s4 + $0x2f8] sm:$0xff] }
 0x18b   : > { %5901 = vmatpush1.msra.mxu1 %v5900_v25  ;;  %7984 = vmatprep.subr.bf16.mxu0 %v7983_v14  ;;  %v455_v14 = vld [vmem:[%s8666_s4 + $0xb8] sm:$0xff] }
 0x18c   : > { %8032 = vmatprep.subr.bf16.mxu1 %v8031_v27  ;;  %5389 = vmatmul.mubr.f32.vlgmr.msra.gmra.mrb[8].mxu0 %v8664_v59  ;;  %v8003_v25 = vpack.c.bf16 %v10714_v52, %v10713_v20  ;;  %v479_v27 = vld [vmem:[%s8666_s4 + $0x178] sm:$0xff]  ;;  %v10165_v20 = vsub.f32 %v477_v19, %v6329_v61 }
 0x18d   : > { %7986 = vmatpush1.bf16.msra.mxu0 %v7985_v47  ;;  %5958 = vmatmul.mubr.f32.vlgmr.msra.gmra.mrb[8].mxu1 %v8664_v59  ;;  %v8051_v47 = vpack.c.bf16 %v10716_v4, %v10715_v33  ;;  %v524_v33 = vld [vmem:[%s8666_s4 + $0x2e0] sm:$0xff]  ;;  %v6333_v4 = vand.u32 4294901760, %v501_v36 }
 0x18e   : > { %8034 = vmatpush1.bf16.msra.mxu1 %v8033_v21  ;;  %7988 = vmatprep.subr.bf16.mxu0 %v7987_v40  ;;  %v10719_v21 = vand.u32 4294901760, %v9923_v55  ;;  %v6327_v55 = vand.u32 4294901760, %v452_v5 }
 0x18f   : > { %8036 = vmatprep.subr.bf16.mxu1 %v8035_v6  ;;  %5479 = vmatprep.mubr.f32.mxu0 %v10639_v15  ;;  %v6894_v6 = vand.u32 4294901760, %v455_v14 }
 0x190   : > { %6048 = vmatprep.mubr.f32.mxu1 %v10639_v15  ;;  %v8005_v40 = vpack.c.bf16 %v10719_v21, %v10718_v34  ;;  %v10167_v52 = vpack.c.bf16 %v6331_v17, %v6327_v55  ;;  %v6902_v34 = vand.u32 4294901760, %v503_v23  ;;  %v6906_v21 = vand.u32 4294901760, %v527_v44 }
 0x191   : > { %7990 = vmatpush1.bf16.msra.mxu0 %v7989_v51  ;;  %v6898_v51 = vand.u32 4294901760, %v479_v27  ;;  %v10179_v19 = vsub.f32 %v452_v5, %v6327_v55 }
 0x192   : > { %8038 = vmatpush1.bf16.msra.mxu1 %v8037_v31  ;;  %5421 = vmatprep.subr.mxu0 %v10004_v12  ;;  %v10720_v31 = vand.u32 4294901760, %v9927_v1  ;;  %v10157_v1 = vpack.c.bf16 %v6329_v61, %v6325_v0  ;;  %v10175_v12 = vsub.f32 %v455_v14, %v6894_v6  ;;  %v10193_v14 = vsub.f32 %v478_v45, %v6900_v42  ;;  %v550_v45 = vld [vmem:[%s8666_s4 + $0x3b0] sm:$0xf] }
 0x193   : > { %5990 = vmatprep.subr.mxu1 %v10015_v9  ;;  %v10159_v62 = vpack.c.bf16 %v6898_v51, %v6894_v6 }
 0x194   : > { %v8053_v10 = vpack.c.bf16 %v10721_v30, %v10720_v31  ;;  %v526_v31 = vld [vmem:[%s8666_s4 + $0x2f0] sm:$0xff]  ;;  %v6339_v30 = vand.u32 4294901760, %v524_v33 }
 0x195   : > { %5424 = vmatpush1.msra.mxu0 %v9961_v28  ;;  %v6908_v28 = vand.u32 4294901760, %v526_v31 }
 0x196   : > { %5993 = vmatpush1.msra.mxu1 %v10028_v63  ;;  %7992 = vmatprep.subr.bf16.mxu0 %v9854_v43  ;;  %v10204_v63 = vpack.c.bf16 %v6906_v21, %v6902_v34 }
 0x197   : > { %8040 = vmatprep.subr.bf16.mxu1 %v9856_v24  ;;  %5482 = vmatmul.mubr.f32.vlgmr.msra.gmra.mrb[8].mxu0 %v8678_v11 }
 0x198   : > { %7994 = vmatpush1.bf16.msra.mxu0 %v9864_v13  ;;  %6051 = vmatmul.mubr.f32.vlgmr.msra.gmra.mrb[8].mxu1 %v8678_v11  ;;  %10723 = vst [vmem:[#allocation4_spill] sm:$0xff] %v10204_v63 }
 0x199   : > { %8042 = vmatpush1.bf16.msra.mxu1 %v9882_v41  ;;  %7996 = vmatprep.subr.bf16.mxu0 %v9897_v49 }
 0x19a   : > { %8044 = vmatprep.subr.bf16.mxu1 %v9901_v22  ;;  %5562 = vmatprep.mubr.f32.mxu0 %v10639_v15 }
 0x19b   : > { %6131 = vmatprep.mubr.f32.mxu1 %v10639_v15 }
 0x19c   : > { %7998 = vmatpush1.bf16.msra.mxu0 %v9914_v39 }
 0x19d   : > { %8046 = vmatpush1.bf16.msra.mxu1 %v10704_v48  ;;  %5505 = vmatprep.subr.mxu0 %v9930_v53 }
 0x19e   : > { %6074 = vmatprep.subr.mxu1 %v9956_v50 }
 0x1a0   : > { %5507 = vmatpush1.msra.mxu0 %v9936_v37 }
 0x1a1   : > { %6076 = vmatpush1.msra.mxu1 %v9963_v57  ;;  %8000 = vmatprep.subr.bf16.mxu0 %v7999_v56  ;;  %v454_v56 = vld [vmem:[%s8666_s4 + $0xb0] sm:$0xff] }
 0x1a2   : > { %8048 = vmatprep.subr.bf16.mxu1 %v8047_v35  ;;  %5566 = vmatmul.mubr.f32.vlgmr.msra.gmra.mrb[8].mxu0 %v10717_v16  ;;  %v525_v35 = vld [vmem:[%s8666_s4 + $0x2e8] sm:$0xff] }
 0x1a3   : > { %8002 = vmatpush1.bf16.msra.mxu0 %v8001_v29  ;;  %6135 = vmatmul.mubr.f32.vlgmr.msra.gmra.mrb[8].mxu1 %v10717_v16  ;;  %v6896_v29 = vand.u32 4294901760, %v454_v56 }
 0x1a4   : > { %8050 = vmatpush1.bf16.msra.mxu1 %v8049_v7  ;;  %8004 = vmatprep.subr.bf16.mxu0 %v8003_v25  ;;  %v10163_v7 = vsub.f32 %v453_v60, %v6325_v0  ;;  %v500_v25 = vld [vmem:[%s8666_s4 + $0x220] sm:$0xff]  ;;  %v10177_v60 = vsub.f32 %v479_v27, %v6898_v51  ;;  %v10181_v0 = vsub.f32 %v476_v54, %v6331_v17 }
 0x1a5   : > { %8052 = vmatprep.subr.bf16.mxu1 %v8051_v47  ;;  %5666 = vmatprep.mubr.f32.mxu0 %v10639_v15  ;;  %v6337_v47 = vand.u32 4294901760, %v525_v35  ;;  %v10185_v9 = vpack.c.bf16 %v6900_v42, %v6896_v29  ;;  %v6335_v61 = vand.u32 4294901760, %v500_v25  ;;  %v10195_v27 = vsub.f32 %v501_v36, %v6333_v4 }
 0x1a6   : > { %6235 = vmatprep.mubr.f32.mxu1 %v10639_v15  ;;  %v10619_v55 = vand.u32 4294901760, %v10163_v7  ;;  %v10618_v36 = vand.u32 4294901760, %v10165_v20  ;;  %v10614_v42 = vand.u32 4294901760, %v10177_v60 }
 0x1a7   : > { %8006 = vmatpush1.bf16.msra.mxu0 %v8005_v40  ;;  %v502_v40 = vld [vmem:[%s8666_s4 + $0x230] sm:$0xff]  ;;  %v10200_v54 = vpack.c.bf16 %v6337_v47, %v6333_v4  ;;  %v10202_v6 = vsub.f32 %v525_v35, %v6337_v47  ;;  %v10217_v17 = vpack.c.bf16 %v6339_v30, %v6335_v61  ;;  %v10226_v35 = vsub.f32 %v524_v33, %v6339_v30 }
 0x1a8   : > { %8054 = vmatpush1.bf16.msra.mxu1 %v8053_v10  ;;  %5607 = vmatprep.subr.mxu0 %v10722_v58  ;;  %v549_v10 = vld [vmem:[%s8666_s4 + $0x3a8] sm:$0xf]  ;;  %v6904_v5 = vand.u32 4294901760, %v502_v40  ;;  %v630_v58 = vsel %vm562_vm1, %v550_v45, 0  ;;  %v10613_v33 = vand.u32 4294901760, %v10179_v19  ;;  %v6426_v4 = vsub.f32 %v10165_v20, %v10618_v36 }
 0x1a9   : > { %6176 = vmatprep.subr.mxu1 %v5892_v8  ;;  %v10187_v8 = vsub.f32 %v454_v56, %v6896_v29  ;;  %v627_v51 = vsel %vm562_vm1, %v549_v10, 0  ;;  %10724 = vst [vmem:[#allocation7_spill] sm:$0xff] %v10217_v17  ;;  %v10219_v56 = vsub.f32 %v500_v25, %v6335_v61  ;;  %v10617_v29 = vand.u32 4294901760, %v10175_v12 }
 0x1aa   : > { %v10245_v25 = vsub.f32 %v10163_v7, %v10619_v55  ;;  %v10266_v30 = vand.u32 4294901760, %v630_v58 }
 0x1ab   : > { %5611 = vmatpush1.msra.mxu0 %v5329_v18  ;;  %v548_v18 = vld [vmem:[%s8666_s4 + $0x3a0] sm:$0xf]  ;;  %v10610_v47 = vand.u32 4294901760, %v10187_v8  ;;  %v6983_v10 = vsub.f32 %v10175_v12, %v10617_v29 }
 0x1ac   : > { %6180 = vmatpush1.msra.mxu1 %v5898_v26  ;;  %8008 = vmatprep.subr.bf16.mxu0 %v9854_v43  ;;  %v10208_v43 = vsub.f32 %v503_v23, %v6902_v34  ;;  %v10210_v26 = vsub.f32 %v527_v44, %v6906_v21  ;;  %v10228_v23 = vpack.c.bf16 %v6908_v28, %v6904_v5  ;;  %v10611_v34 = vand.u32 4294901760, %v10193_v14 }
 0x1ad   : > { %8056 = vmatprep.subr.bf16.mxu1 %v9856_v24  ;;  %5668 = vmatmul.mubr.f32.vlgmr.msra.gmra.mrb[8].mxu0 %v8664_v59  ;;  %v551_v24 = vld [vmem:[%s8666_s4 + $0x3b8] sm:$0xf]  ;;  %v10257_v21 = vsub.f32 %v526_v31, %v6908_v28  ;;  %v6415_v31 = vand.u32 4294901760, %v10245_v25 }
 0x1ae   : > { %8010 = vmatpush1.bf16.msra.mxu0 %v9864_v13  ;;  %6237 = vmatmul.mubr.f32.vlgmr.msra.gmra.mrb[8].mxu1 %v8664_v59  ;;  %v624_v13 = vsel %vm562_vm1, %v548_v18, 0  ;;  %v633_v44 = vsel %vm562_vm1, %v551_v24, 0  ;;  %v10620_v28 = vand.u32 4294901760, %v10208_v43  ;;  %v10621_v18 = vand.u32 4294901760, %v10210_v26 }
 0x1af   : > { %8058 = vmatpush1.bf16.msra.mxu1 %v9882_v41  ;;  %8012 = vmatprep.subr.bf16.mxu0 %v9897_v49  ;;  %v10230_v41 = vsub.f32 %v502_v40, %v6904_v5  ;;  %v10233_v49 = vand.u32 4294901760, %v627_v51  ;;  %v10259_v40 = vand.u32 4294901760, %v633_v44  ;;  %v6420_v5 = vsub.f32 %v10179_v19, %v10613_v33 }
 0x1b0   : > { %8060 = vmatprep.subr.bf16.mxu1 %v9901_v22  ;;  %5748 = vmatprep.mubr.f32.mxu0 %v10639_v15  ;;  %v10239_v22 = vand.u32 4294901760, %v624_v13  ;;  %v6427_v24 = vand.u32 4294901760, %v6426_v4  ;;  %v7001_v45 = vsub.f32 %v10193_v14, %v10611_v34  ;;  %v10623_v4 = vand.u32 4294901760, %v10219_v56 }
 0x1b1   : > { %6317 = vmatprep.mubr.f32.mxu1 %v10639_v15  ;;  %10725 = vst [vmem:[#allocation8_spill] sm:$0xff] %v10233_v49  ;;  %v6984_v34 = vand.u32 4294901760, %v6983_v10  ;;  %v7019_v10 = vsub.f32 %v10210_v26, %v10621_v18  ;;  %v10318_v29 = vsub.f32 %v633_v44, %v10259_v40  ;;  %v10331_v18 = vsub.f32 %v630_v58, %v10266_v30 }
 0x1b2   : > { %8014 = vmatpush1.bf16.msra.mxu0 %v9914_v39  ;;  %v10612_v39 = vand.u32 4294901760, %v10181_v0  ;;  %v10264_v61 = vsub.f32 %v624_v13, %v10239_v22  ;;  %v7002_v33 = vand.u32 4294901760, %v7001_v45 }
 0x1b3   : > { %8062 = vmatpush1.bf16.msra.mxu1 %v10704_v48  ;;  %5691 = vmatprep.subr.mxu0 %v9930_v53  ;;  %v10616_v48 = vand.u32 4294901760, %v10195_v27  ;;  %v10615_v53 = vand.u32 4294901760, %v10202_v6  ;;  %v7030_v58 = vand.u32 4294901760, %v10318_v29 }
 0x1b4   : > { %6260 = vmatprep.subr.mxu1 %v9956_v50  ;;  %v6995_v50 = vsub.f32 %v10177_v60, %v10614_v42  ;;  %v6432_v13 = vsub.f32 %v10181_v0, %v10612_v39  ;;  %v10307_v42 = vsub.f32 %v627_v51, %v10233_v49  ;;  %v6421_v51 = vand.u32 4294901760, %v6420_v5 }
 0x1b5   : > { %v6450_v25 = vsub.f32 %v10202_v6, %v10615_v53  ;;  %v10726_v5 = vand.u32 4294901760, %v10230_v41 }
 0x1b6   : > { %5693 = vmatpush1.msra.mxu0 %v9936_v37  ;;  %v6989_v37 = vsub.f32 %v10187_v8, %v10610_v47  ;;  %v10622_v47 = vand.u32 4294901760, %v10226_v35  ;;  %v6996_v53 = vand.u32 4294901760, %v6995_v50  ;;  %v6433_v36 = vand.u32 4294901760, %v6432_v13 }
 0x1b7   : > { %6262 = vmatpush1.msra.mxu1 %v9963_v57  ;;  %5750 = vmatmul.mubr.f32.vlgmr.msra.gmra.mrb[8].mxu0 %v8664_v59  ;;  %v6438_v57 = vsub.f32 %v10195_v27, %v10616_v48  ;;  %v7007_v48 = vsub.f32 %v10208_v43, %v10620_v28  ;;  %v6451_v39 = vand.u32 4294901760, %v6450_v25  ;;  %v6444_v28 = vsub.f32 %v10219_v56, %v10623_v4 }
 0x1b8   : > { %6319 = vmatmul.mubr.f32.vlgmr.msra.gmra.mrb[8].mxu1 %v8664_v59  ;;  %8064 = vmatprep.subr.bf16.mxu0 %v10157_v1  ;;  %v6990_v55 = vand.u32 4294901760, %v6989_v37  ;;  %v6456_v44 = vsub.f32 %v10226_v35, %v10622_v47  ;;  %v7013_v13 = vsub.f32 %v10230_v41, %v10726_v5  ;;  %v10727_v37 = vand.u32 4294901760, %v10257_v21 }
 0x1b9   : > { %8112 = vmatprep.subr.bf16.mxu1 %v10159_v62  ;;  %8066 = vmatpush1.bf16.msra.mxu0 %v10167_v52  ;;  %v6439_v50 = vand.u32 4294901760, %v6438_v57  ;;  %v8071_v25 = vpack.c.bf16 %v6427_v24, %v6415_v31  ;;  %v7008_v47 = vand.u32 4294901760, %v7007_v48  ;;  %v7020_v4 = vand.u32 4294901760, %v7019_v10  ;;  %v10345_v57 = vpop.permute.xlu0 %555 }
 0x1ba   : > { %8114 = vmatpush1.bf16.msra.mxu1 %v10185_v9  ;;  %8068 = vmatprep.subr.bf16.mxu0 %v10200_v54  ;;  %v7025_v45 = vsub.f32 %v10257_v21, %v10727_v37  ;;  %v8119_v46 = vpack.c.bf16 %v6996_v53, %v6984_v34  ;;  %v8073_v3 = vpack.c.bf16 %v6433_v36, %v6421_v51  ;;  %v6467_v37 = vand.u32 4294901760, %v10264_v61 }
 0x1bb   : > { %8116 = vmatprep.subr.bf16.mxu1 %v10204_v63  ;;  %6399 = vmatprep.mubr.f32.mxu0 %v10639_v15  ;;  %v8121_v5 = vpack.c.bf16 %v7002_v33, %v6990_v55  ;;  %v8075_v16 = vpack.c.bf16 %v6451_v39, %v6439_v50  ;;  %v6457_v63 = vand.u32 4294901760, %v6456_v44  ;;  %v10728_v48 = vand.u32 4294901760, %v10307_v42 }
 0x1bc   : > { %6968 = vmatprep.mubr.f32.mxu1 %v10639_v15  ;;  %v7026_v31 = vand.u32 4294901760, %v7025_v45  ;;  %v7036_v10 = vand.u32 4294901760, %v10331_v18  ;;  %v8123_v55 = vpack.c.bf16 %v7020_v4, %v7008_v47  ;;  %v7031_v36 = vsub.f32 %v10318_v29, %v7030_v58 }
 0x1bd   : > { %8070 = vmatpush1.bf16.msra.mxu0 %v10217_v17  ;;  %v6445_v17 = vand.u32 4294901760, %v6444_v28  ;;  %v6462_v24 = vsub.f32 %v10307_v42, %v10728_v48  ;;  %v8159_v33 = vadd.f32 %v10056_v38, %v10345_v57  ;;  %v6468_v34 = vsub.f32 %v10264_v61, %v6467_v37 }
 0x1be   : > { %8118 = vmatpush1.bf16.msra.mxu1 %v10228_v23  ;;  %6342 = vmatprep.subr.mxu0 %v10233_v49  ;;  %v7014_v49 = vand.u32 4294901760, %v7013_v13  ;;  %v8160_v47 = vadd.f32 %v10063_v2, %v10345_v57  ;;  %v7037_v38 = vsub.f32 %v10331_v18, %v7036_v10  ;;  %v8079_v13 = vpack.c.bf16 %v10165_v20, %v10163_v7 }
 0x1bf   : > { %6911 = vmatprep.subr.mxu1 %v10259_v40  ;;  %v8077_v39 = vpack.c.bf16 %v6457_v63, %v6445_v17  ;;  %v6463_v28 = vand.u32 4294901760, %v6462_v24  ;;  %v7032_v63 = vand.u32 4294901760, %v7031_v36  ;;  %v8129_v24 = vpack.c.bf16 %v10193_v14, %v10187_v8 }
 0x1c0   : > { %v7464_v50 = vmax.f32 %v8160_v47, 0.0  ;;  %v7038_v44 = vand.u32 4294901760, %v7037_v38  ;;  %v8131_v36 = vpack.c.bf16 %v10210_v26, %v10208_v43  ;;  %v10730_v47 = vld [vmem:[#allocation7_spill] sm:$0xff] }
 0x1c1   : > { %6344 = vmatpush1.msra.mxu0 %v10239_v22 }
 0x1c2   : > { %6913 = vmatpush1.msra.mxu1 %v10266_v30  ;;  %8072 = vmatprep.subr.bf16.mxu0 %v8071_v25  ;;  %v8127_v25 = vpack.c.bf16 %v10177_v60, %v10175_v12 }
 0x1c3   : > { %8120 = vmatprep.subr.bf16.mxu1 %v8119_v46  ;;  %6405 = vmatmul.mubr.f32.vlgmr.msra.gmra.mrb[10].mxu0 %v8801_v32  ;;  %v8125_v46 = vpack.c.bf16 %v7026_v31, %v7014_v49  ;;  %v6469_v49 = vand.u32 4294901760, %v6468_v34  ;;  %v8081_v31 = vpack.c.bf16 %v10181_v0, %v10179_v19  ;;  %v10729_v34 = vld [vmem:[#allocation4_spill] sm:$0xff] }
 0x1c4   : > { %8074 = vmatpush1.bf16.msra.mxu0 %v8073_v3  ;;  %6974 = vmatmul.mubr.f32.vlgmr.msra.gmra.mrb[10].mxu1 %v8801_v32  ;;  %v10363_v53 = vpop.f32.mrb[2].mxu0 }
 0x1c5   : > { %8122 = vmatpush1.bf16.msra.mxu1 %v8121_v5  ;;  %8076 = vmatprep.subr.bf16.mxu0 %v8075_v16  ;;  %v2906_v3 = vpop.f32.mrb[2].mxu1  ;;  %v10370_v32 = vpop.f32.mrb[3].mxu0  ;;  %v7463_v16 = vmax.f32 %v8159_v33, 0.0  ;;  %v8085_v33 = vpack.c.bf16 %v10226_v35, %v10219_v56 }
 0x1c6   : > { %8124 = vmatprep.subr.bf16.mxu1 %v8123_v55  ;;  %6525 = vmatprep.mubr.f32.mxu0 %v10639_v15  ;;  %v8165_v17 = vadd.f32 %v2906_v3, %v10345_v57  ;;  %v2908_v4 = vpop.f32.mrb[3].mxu1  ;;  %v8083_v55 = vpack.c.bf16 %v10202_v6, %v10195_v27  ;;  %v10734_v3 = vand.u32 4294901760, %v10175_v12 }
 0x1c7   : > { %7094 = vmatprep.mubr.f32.mxu1 %v10639_v15  ;;  %v8166_v2 = vadd.f32 %v2908_v4, %v10345_v57  ;;  %v10736_v4 = vand.u32 4294901760, %v10179_v19  ;;  %v10743_v19 = vand.u32 4294901760, %v10210_v26  ;;  %v10749_v26 = vand.u32 4294901760, %v10307_v42 }
 0x1c8   : > { %8078 = vmatpush1.bf16.msra.mxu0 %v8077_v39  ;;  %v7469_v51 = vmax.f32 %v8165_v17, 0.0  ;;  %v8133_v39 = vpack.c.bf16 %v10257_v21, %v10230_v41 }
 0x1c9   : > { %8126 = vmatpush1.bf16.msra.mxu1 %v8125_v46  ;;  %6464 = vmatprep.subr.mxu0 %v6463_v28  ;;  %v7470_v45 = vmax.f32 %v8166_v2, 0.0  ;;  %v10731_v46 = vld [vmem:[#allocation8_spill] sm:$0xff]  ;;  %v10732_v28 = vand.u32 4294901760, %v10163_v7  ;;  %v10737_v2 = vand.u32 4294901760, %v10181_v0  ;;  %v10739_v7 = vand.u32 4294901760, %v10193_v14 }
 0x1ca   : > { %7033 = vmatprep.subr.mxu1 %v7032_v63  ;;  %v10380_v5 = vmax.f32 %v7463_v16, %v7469_v51  ;;  %v10735_v63 = vand.u32 4294901760, %v10177_v60  ;;  %v10740_v51 = vand.u32 4294901760, %v10195_v27  ;;  %v10742_v60 = vand.u32 4294901760, %v10208_v43 }
 0x1cb   : > { %v10384_v48 = vmax.f32 %v7464_v50, %v7470_v45  ;;  %v8097_v16 = vpack.c.bf16 %v10737_v2, %v10736_v4  ;;  %v10741_v50 = vand.u32 4294901760, %v10202_v6  ;;  %v10746_v14 = vand.u32 4294901760, %v10226_v35 }
 0x1cc   : > { %6470 = vmatpush1.msra.mxu0 %v6469_v49  ;;  %v8143_v17 = vpack.c.bf16 %v10735_v63, %v10734_v3  ;;  %v10738_v49 = vand.u32 4294901760, %v10187_v8  ;;  %v8147_v0 = vpack.c.bf16 %v10743_v19, %v10742_v60  ;;  %v10745_v8 = vand.u32 4294901760, %v10219_v56 }
 0x1cd   : > { %7039 = vmatpush1.msra.mxu1 %v7038_v44  ;;  %8080 = vmatprep.subr.bf16.mxu0 %v8079_v13  ;;  %v8099_v12 = vpack.c.bf16 %v10741_v50, %v10740_v51  ;;  %v10744_v44 = vld [vmem:[#allocation3_spill] sm:$0xff]  ;;  %v10747_v6 = vand.u32 4294901760, %v10230_v41  ;;  %v10748_v43 = vand.u32 4294901760, %v10257_v21  ;;  %v8164_v56 = vadd.f32 %v10370_v32, %v10345_v57 }
 0x1ce   : > { %8128 = vmatprep.subr.bf16.mxu1 %v8127_v25  ;;  %6527 = vmatmul.mubr.f32.vlgmr.msra.gmra.mrb[10].mxu0 %v8664_v59  ;;  %v8101_v27 = vpack.c.bf16 %v10746_v14, %v10745_v8 }
 0x1cf   : > { %8082 = vmatpush1.bf16.msra.mxu0 %v8081_v31  ;;  %7096 = vmatmul.mubr.f32.vlgmr.msra.gmra.mrb[10].mxu1 %v8664_v59  ;;  %v8149_v13 = vpack.c.bf16 %v10748_v43, %v10747_v6 }
 0x1d0   : > { %8130 = vmatpush1.bf16.msra.mxu1 %v8129_v24  ;;  %8084 = vmatprep.subr.bf16.mxu0 %v8083_v55 }
 0x1d1   : > { %8132 = vmatprep.subr.bf16.mxu1 %v8131_v36  ;;  %6617 = vmatprep.mubr.f32.mxu0 %v10639_v15 }
 0x1d2   : > { %7186 = vmatprep.mubr.f32.mxu1 %v10639_v15 }
 0x1d3   : > { %8086 = vmatpush1.bf16.msra.mxu0 %v8085_v33 }
 0x1d4   : > { %8134 = vmatpush1.bf16.msra.mxu1 %v8133_v39  ;;  %6559 = vmatprep.subr.mxu0 %v10307_v42 }
 0x1d5   : > { %7128 = vmatprep.subr.mxu1 %v10318_v29 }
 0x1d7   : > { %6562 = vmatpush1.msra.mxu0 %v10264_v61 }
 0x1d8   : > { %7131 = vmatpush1.msra.mxu1 %v10331_v18  ;;  %8088 = vmatprep.subr.bf16.mxu0 %v10157_v1 }
 0x1d9   : > { %8136 = vmatprep.subr.bf16.mxu1 %v10159_v62  ;;  %6620 = vmatmul.mubr.f32.vlgmr.msra.gmra.mrb[10].mxu0 %v8678_v11 }
 0x1da   : > { %8090 = vmatpush1.bf16.msra.mxu0 %v10167_v52  ;;  %7189 = vmatmul.mubr.f32.vlgmr.msra.gmra.mrb[10].mxu1 %v8678_v11  ;;  %v10733_v11 = vand.u32 4294901760, %v10165_v20  ;;  %v8145_v20 = vpack.c.bf16 %v10739_v7, %v10738_v49 }
 0x1db   : > { %8138 = vmatpush1.bf16.msra.mxu1 %v10185_v9  ;;  %8092 = vmatprep.subr.bf16.mxu0 %v10200_v54 }
 0x1dc   : > { %8140 = vmatprep.subr.bf16.mxu1 %v10729_v34  ;;  %6700 = vmatprep.mubr.f32.mxu0 %v10639_v15  ;;  %v8095_v38 = vpack.c.bf16 %v10733_v11, %v10732_v28 }
 0x1dd   : > { %7269 = vmatprep.mubr.f32.mxu1 %v10639_v15 }
 0x1de   : > { %8094 = vmatpush1.bf16.msra.mxu0 %v10730_v47 }
 0x1df   : > { %8142 = vmatpush1.bf16.msra.mxu1 %v10228_v23  ;;  %6643 = vmatprep.subr.mxu0 %v10731_v46 }
 0x1e0   : > { %7212 = vmatprep.subr.mxu1 %v10259_v40 }
 0x1e2   : > { %6645 = vmatpush1.msra.mxu0 %v10239_v22 }
 0x1e3   : > { %7214 = vmatpush1.msra.mxu1 %v10266_v30  ;;  %8096 = vmatprep.subr.bf16.mxu0 %v8095_v38 }
 0x1e4   : > { %8144 = vmatprep.subr.bf16.mxu1 %v8143_v17  ;;  %6704 = vmatmul.mubr.f32.vlgmr.msra.gmra.mrb[10].mxu0 %v10744_v44 }
 0x1e5   : > { %8098 = vmatpush1.bf16.msra.mxu0 %v8097_v16  ;;  %7273 = vmatmul.mubr.f32.vlgmr.msra.gmra.mrb[10].mxu1 %v10744_v44 }
 0x1e6   : > { %8146 = vmatpush1.bf16.msra.mxu1 %v8145_v20  ;;  %8100 = vmatprep.subr.bf16.mxu0 %v8099_v12 }
 0x1e7   : > { %8148 = vmatprep.subr.bf16.mxu1 %v8147_v0  ;;  %6804 = vmatprep.mubr.f32.mxu0 %v10639_v15 }
 0x1e8   : > { %7373 = vmatprep.mubr.f32.mxu1 %v10639_v15 }
 0x1e9   : > { %8102 = vmatpush1.bf16.msra.mxu0 %v8101_v27 }
 0x1ea   : > { %8150 = vmatpush1.bf16.msra.mxu1 %v8149_v13  ;;  %6745 = vmatprep.subr.mxu0 %v10749_v26 }
 0x1eb   : > { %7314 = vmatprep.subr.mxu1 %v7030_v58 }
 0x1ed   : > { %6749 = vmatpush1.msra.mxu0 %v6467_v37  ;;  %v7468_v37 = vmax.f32 %v8164_v56, 0.0 }
 0x1ee   : > { %7318 = vmatpush1.msra.mxu1 %v7036_v10  ;;  %8104 = vmatprep.subr.bf16.mxu0 %v10157_v1  ;;  %v10750_v1 = vld [vmem:[#allocation5_spill] sm:$0xff] }
 0x1ef   : > { %8152 = vmatprep.subr.bf16.mxu1 %v10159_v62  ;;  %6806 = vmatmul.mubr.f32.vlgmr.msra.gmra.mrb[10].mxu0 %v8664_v59  ;;  %v8161_v62 = vadd.f32 %v10750_v1, %v10345_v57 }
 0x1f0   : > { %8106 = vmatpush1.bf16.msra.mxu0 %v10167_v52  ;;  %7375 = vmatmul.mubr.f32.vlgmr.msra.gmra.mrb[10].mxu1 %v8664_v59 }
 0x1f1   : > { %8154 = vmatpush1.bf16.msra.mxu1 %v10185_v9  ;;  %8108 = vmatprep.subr.bf16.mxu0 %v10200_v54  ;;  %v8163_v9 = vadd.f32 %v10363_v53, %v10345_v57 }
 0x1f2   : > { %8156 = vmatprep.subr.bf16.mxu1 %v10729_v34  ;;  %6886 = vmatprep.mubr.f32.mxu0 %v10639_v15 }
 0x1f3   : > { %7455 = vmatprep.mubr.f32.mxu1 %v10639_v15  ;;  %v10751_v15 = vld [vmem:[#allocation6_spill] sm:$0xff] }
 0x1f4   : > { %8110 = vmatpush1.bf16.msra.mxu0 %v10730_v47  ;;  %v8162_v52 = vadd.f32 %v10751_v15, %v10345_v57 }
 0x1f5   : > { %8158 = vmatpush1.bf16.msra.mxu1 %v10228_v23  ;;  %6829 = vmatprep.subr.mxu0 %v10731_v46 }
 0x1f6   : > { %7398 = vmatprep.subr.mxu1 %v10259_v40  ;;  %v7466_v61 = vmax.f32 %v8162_v52, 0.0 }
 0x1f8   : > { %6831 = vmatpush1.msra.mxu0 %v10239_v22  ;;  %v7465_v22 = vmax.f32 %v8161_v62, 0.0 }
 0x1f9   : > { %7400 = vmatpush1.msra.mxu1 %v10266_v30  ;;  %6888 = vmatmul.mubr.f32.vlgmr.msra.gmra.mrb[10].mxu0 %v8664_v59  ;;  %v7467_v30 = vmax.f32 %v8163_v9, 0.0 }
 0x1fa   : > { %7457 = vmatmul.mubr.f32.vlgmr.msra.gmra.mrb[10].mxu1 %v8664_v59 }
 0x206   : > { %v3475_v54 = vpop.f32.mrb[4].mxu0 }
 0x207   : > { %v8167_v35 = vadd.f32 %v3475_v54, %v10345_v57  ;;  %v4044_v23 = vpop.f32.mrb[4].mxu1  ;;  %v3477_v41 = vpop.f32.mrb[5].mxu0 }
 0x208   : > { %v8169_v29 = vadd.f32 %v4044_v23, %v10345_v57  ;;  %v8168_v59 = vadd.f32 %v3477_v41, %v10345_v57  ;;  %v4046_v42 = vpop.f32.mrb[5].mxu1 }
 0x209   : > { %v7471_v21 = vmax.f32 %v8167_v35, 0.0  ;;  %v8170_v40 = vadd.f32 %v4046_v42, %v10345_v57 }
 0x20a   : > { %v7473_v18 = vmax.f32 %v8169_v29, 0.0  ;;  %v7472_v58 = vmax.f32 %v8168_v59, 0.0 }
 0x20b   : > { %v7489_v10 = vmax.f32 %v7465_v22, %v7471_v21  ;;  %v7474_v53 = vmax.f32 %v8170_v40, 0.0 }
 0x20c   : > { %v7491_v32 = vmax.f32 %v7467_v30, %v7473_v18  ;;  %v7490_v45 = vmax.f32 %v7466_v61, %v7472_v58 }
 0x20d   : > { %v7492_v25 = vmax.f32 %v7468_v37, %v7474_v53 }
 0x248   : > { %v4613_v31 = vpop.f32.mrb[6].mxu0 }
 0x249   : > { %v8171_v24 = vadd.f32 %v4613_v31, %v10345_v57  ;;  %v5182_v55 = vpop.f32.mrb[6].mxu1  ;;  %v4615_v36 = vpop.f32.mrb[7].mxu0 }
 0x24a   : > { %v8173_v33 = vadd.f32 %v5182_v55, %v10345_v57  ;;  %v8172_v39 = vadd.f32 %v4615_v36, %v10345_v57  ;;  %v5184_v34 = vpop.f32.mrb[7].mxu1 }
 0x24b   : > { %v7475_v47 = vmax.f32 %v8171_v24, 0.0  ;;  %v8174_v46 = vadd.f32 %v5184_v34, %v10345_v57 }
 0x24c   : > { %v7477_v28 = vmax.f32 %v8173_v33, 0.0  ;;  %v7476_v11 = vmax.f32 %v8172_v39, 0.0 }
 0x24d   : > { %v7493_v38 = vmax.f32 %v10380_v5, %v7475_v47  ;;  %v7478_v3 = vmax.f32 %v8174_v46, 0.0 }
 0x24e   : > { %v7495_v63 = vmax.f32 %v7489_v10, %v7477_v28  ;;  %v7494_v17 = vmax.f32 %v10384_v48, %v7476_v11 }
 0x24f   : > { %v7496_v4 = vmax.f32 %v7490_v45, %v7478_v3 }
 0x28a   : > { %v5751_v2 = vpop.f32.mrb[8].mxu0 }
 0x28b   : > { %v8175_v16 = vadd.f32 %v5751_v2, %v10345_v57  ;;  %v6320_v49 = vpop.f32.mrb[8].mxu1  ;;  %v5753_v7 = vpop.f32.mrb[9].mxu0 }
 0x28c   : > { %v8177_v20 = vadd.f32 %v6320_v49, %v10345_v57  ;;  %v8176_v51 = vadd.f32 %v5753_v7, %v10345_v57  ;;  %v6322_v5 = vpop.f32.mrb[9].mxu1 }
 0x28d   : > { %v7479_v50 = vmax.f32 %v8175_v16, 0.0  ;;  %v8178_v12 = vadd.f32 %v6322_v5, %v10345_v57 }
 0x28e   : > { %v7481_v48 = vmax.f32 %v8177_v20, 0.0  ;;  %v7480_v60 = vmax.f32 %v8176_v51, 0.0 }
 0x28f   : > { %v7497_v19 = vmax.f32 %v7491_v32, %v7479_v50  ;;  %v7482_v0 = vmax.f32 %v8178_v12, 0.0 }
 0x290   : > { %v7499_v44 = vmax.f32 %v7493_v38, %v7481_v48  ;;  %v7498_v8 = vmax.f32 %v7492_v25, %v7480_v60 }
 0x291   : > { %v7500_v14 = vmax.f32 %v7494_v17, %v7482_v0 }
 0x292   : > { %7505 = vst [vmem:[%s429_s11] sm:$0xff] %v7499_v44 }
 0x293   : > { %7506 = vst [vmem:[%s429_s11 + $0x8] sm:$0xff] %v7500_v14 }
 0x2cc   : > { %v6889_v27 = vpop.f32.mrb[10].mxu0 }
 0x2cd   : > { %v8179_v6 = vadd.f32 %v6889_v27, %v10345_v57  ;;  %v7458_v43 = vpop.f32.mrb[10].mxu1  ;;  %v6891_v13 = vpop.f32.mrb[11].mxu0 }
 0x2ce   : > { %v8181_v26 = vadd.f32 %v7458_v43, %v10345_v57  ;;  %v8180_v1 = vadd.f32 %v6891_v13, %v10345_v57  ;;  %v7460_v62 = vpop.f32.mrb[11].mxu1 }
 0x2cf   : > { %v7483_v15 = vmax.f32 %v8179_v6, 0.0  ;;  %v8182_v52 = vadd.f32 %v7460_v62, %v10345_v57 }
 0x2d0   : > { %v7485_v9 = vmax.f32 %v8181_v26, 0.0  ;;  %v7484_v54 = vmax.f32 %v8180_v1, 0.0 }
 0x2d1   : > { %v7501_v56 = vmax.f32 %v7495_v63, %v7483_v15  ;;  %v7486_v35 = vmax.f32 %v8182_v52, 0.0 }
 0x2d2   : > { %v7503_v23 = vmax.f32 %v7497_v19, %v7485_v9  ;;  %v7502_v41 = vmax.f32 %v7496_v4, %v7484_v54 }
 0x2d3   : > { %7507 = vst [vmem:[%s429_s11 + $0x10] sm:$0xff] %v7501_v56  ;;  %v7504_v29 = vmax.f32 %v7498_v8, %v7486_v35 }
 0x2d4   : > { %7509 = vst [vmem:[%s429_s11 + $0x20] sm:$0xff] %v7503_v23  ;;  %7508 = vst [vmem:[%s429_s11 + $0x18] sm:$0xff] %v7502_v41 }
 0x2d5   : > { %7510 = vst [vmem:[%s429_s11 + $0x28] sm:$0xff] %v7504_v29 }
 0x2d6 PF: > { %p10_p9 = scmp.ge.s32.totalorder %s8395_s16, 4   ;;  %s10752_s12 = smov %s8350_s13 }
 0x2d7   : > { %s10753_s13 = smov %s8404_s19  ;;  %s10754_s14 = smov %s8395_s16 }
 0x2d8   :  { %12 = sbr.rel (!%p10_p9) target bundleno = 2 (0x2), region = 90 }

</bundles_post_ra>
